<compile_context>
chip_gen: v7x
topology: tpu7x:2x2x1
jax: 0.10.0
libtpu: 0.0.40
codegen_flags: <defaults>
</compile_context>

<pallas_src>
import functools

import numpy as np
import jax
import jax.numpy as jnp
from jax.experimental import pallas as pl
from jax.experimental.pallas import tpu as pltpu


# ----------------------------------------------------------------------------
# Pallas kernels
# ----------------------------------------------------------------------------
def _matmul_bias_kernel(w_ref, x_ref, b_ref, o_ref, *, apply_relu):
    # (Cout, K) @ (K, tm) on the MXU (bf16 feed), f32 accumulate,
    # bias + ReLU epilogue in f32, lane-dense store.
    acc = jnp.dot(w_ref[...], x_ref[...], preferred_element_type=jnp.float32)
    acc = acc + b_ref[...]                      # (Cout, 1) broadcast over lanes
    if apply_relu:
        acc = jnp.maximum(acc, 0.0)
    o_ref[...] = acc.astype(o_ref.dtype)


def _pick_m_tile(m, max_tile=512):
    """Largest lane-aligned (multiple of 128) M tile <= max_tile dividing m.

    512 lanes * (K + Cout) elems double-buffered is well under the v7x 64 MiB
    VMEM at these channel counts; v6e/v5e could take larger tiles but 512 is
    safe on every generation.
    """
    if m <= max_tile:
        return m
    for t in range(max_tile, 127, -128):
        if t % 128 == 0 and m % t == 0:
            return t
    return m


def matmul_bias_T(w, x, bias, apply_relu=False, out_dtype=jnp.float32):
    """O(Cout, M) = w(Cout, K) @ x(K, M) + bias(Cout,)  [+ ReLU].

    Output is lane-dense (M on lanes).  Grid tiles M; weights/bias stay
    resident in VMEM across all grid steps.
    """
    cout, k = w.shape
    k2, m = x.shape
    assert k == k2
    tm = _pick_m_tile(m)
    grid = (m // tm,)
    bias2 = bias.reshape(cout, 1).astype(jnp.float32)
    kernel = functools.partial(_matmul_bias_kernel, apply_relu=apply_relu)
    # TODO(synk): for real HRNet channel counts add a K grid axis with a
    #             persistent VMEM f32 accumulator (pl.when init/finalize).
    return pl.pallas_call(
        kernel,
        out_shape=jax.ShapeDtypeStruct((cout, m), out_dtype),
        grid=grid,
        in_specs=[
            pl.BlockSpec((cout, k), lambda i: (0, 0)),    # weights: resident
            pl.BlockSpec((k, tm), lambda i: (0, i)),      # activations: tiled
            pl.BlockSpec((cout, 1), lambda i: (0, 0)),    # bias: resident
        ],
        out_specs=pl.BlockSpec((cout, tm), lambda i: (0, i)),
        compiler_params=pltpu.CompilerParams(dimension_semantics=("parallel",)),
    )(w, x, bias2)


def _proj2_kernel(x0_ref, x1_ref, a0_ref, b0_ref, a1_ref, b1_ref, o_ref):
    # o[b] = a0 @ x0[b] @ b0 + a1 @ x1[b] @ b1 for every (channel*batch) plane.
    # All planes are processed in a single grid step (matrices loaded once).
    nplanes = o_ref.shape[0]
    for b in range(nplanes):                      # static unroll
        y = jnp.dot(jnp.dot(a0_ref[...], x0_ref[b],
                            preferred_element_type=jnp.float32),
                    b0_ref[...], preferred_element_type=jnp.float32)
        y = y + jnp.dot(jnp.dot(a1_ref[...], x1_ref[b],
                                preferred_element_type=jnp.float32),
                        b1_ref[...], preferred_element_type=jnp.float32)
        o_ref[b] = y.astype(o_ref.dtype)


def _proj1_kernel(x_ref, a_ref, b_ref, o_ref):
    nplanes = o_ref.shape[0]
    for b in range(nplanes):                      # static unroll
        y = jnp.dot(jnp.dot(a_ref[...], x_ref[b],
                            preferred_element_type=jnp.float32),
                    b_ref[...], preferred_element_type=jnp.float32)
        o_ref[b] = y.astype(o_ref.dtype)


def fused_avg_project(x0, x1, a0, b0t, a1, b1t):
    """Heatmap path: a0 @ x0[b] @ b0t + a1 @ x1[b] @ b1t per plane.

    The 1/num_heatmaps scale and both bilinear resizes are already folded into
    the constant matrices a0/a1 (rows) and b0t/b1t (cols).
    """
    nb, h0, w0 = x0.shape
    _, h1, w1 = x1.shape
    ho, wo = a0.shape[0], b0t.shape[1]
    return pl.pallas_call(
        _proj2_kernel,
        out_shape=jax.ShapeDtypeStruct((nb, ho, wo), jnp.float32),
        grid=(1,),
        in_specs=[
            pl.BlockSpec((nb, h0, w0), lambda i: (0, 0, 0)),
            pl.BlockSpec((nb, h1, w1), lambda i: (0, 0, 0)),
            pl.BlockSpec((ho, h0), lambda i: (0, 0)),
            pl.BlockSpec((w0, wo), lambda i: (0, 0)),
            pl.BlockSpec((ho, h1), lambda i: (0, 0)),
            pl.BlockSpec((w1, wo), lambda i: (0, 0)),
        ],
        out_specs=pl.BlockSpec((nb, ho, wo), lambda i: (0, 0, 0)),
    )(x0.astype(jnp.float32), x1.astype(jnp.float32), a0, b0t, a1, b1t)


def project(x, a, bt):
    """Tag path: a @ x[b] @ bt per plane (composed bilinear resize)."""
    nb, hi, wi = x.shape
    ho, wo = a.shape[0], bt.shape[1]
    return pl.pallas_call(
        _proj1_kernel,
        out_shape=jax.ShapeDtypeStruct((nb, ho, wo), jnp.float32),
        grid=(1,),
        in_specs=[
            pl.BlockSpec((nb, hi, wi), lambda i: (0, 0, 0)),
            pl.BlockSpec((ho, hi), lambda i: (0, 0)),
            pl.BlockSpec((wi, wo), lambda i: (0, 0)),
        ],
        out_specs=pl.BlockSpec((nb, ho, wo), lambda i: (0, 0, 0)),
    )(x.astype(jnp.float32), a, bt)


# ----------------------------------------------------------------------------
# Trace-time bilinear interpolation matrices (torch bilinear, align_corners=False)
# ----------------------------------------------------------------------------
def _bilinear_matrix(out_size, in_size):
    scale = in_size / out_size
    W = np.zeros((out_size, in_size), dtype=np.float32)
    for i in range(out_size):
        src = (i + 0.5) * scale - 0.5
        src = max(src, 0.0)
        i0 = min(int(np.floor(src)), in_size - 1)
        i1 = min(i0 + 1, in_size - 1)
        w1 = src - i0
        W[i, i0] += 1.0 - w1
        W[i, i1] += w1
    return W


# ----------------------------------------------------------------------------
# Conv wrappers (im2col glue in JAX, lane-dense matmul in Pallas) -- CNHW layout
# ----------------------------------------------------------------------------
def conv3x3_s2_cnhw(x, w, b, relu=True, out_dtype=jnp.float32):
    """x: (Cin, N, H, W); w: (Cout, Cin, 3, 3); pad=1, stride=2.  Returns CNHW."""
    cin, n, h, wd = x.shape
    cout = w.shape[0]
    ho, wo = h // 2, wd // 2
    xp = jnp.pad(x, ((0, 0), (0, 0), (1, 1), (1, 1)))
    taps = []
    for kh in range(3):
        for kw in range(3):
            taps.append(jax.lax.slice(
                xp, (0, 0, kh, kw),
                (cin, n, kh + 2 * (ho - 1) + 1, kw + 2 * (wo - 1) + 1),
                (1, 1, 2, 2)))                     # (Cin, N, Ho, Wo)
    cols = jnp.stack(taps, axis=1)                 # (Cin, 9, N, Ho, Wo)
    cols = cols.reshape(cin * 9, n * ho * wo).astype(jnp.bfloat16)
    wmat = w.reshape(cout, cin * 9).astype(jnp.bfloat16)
    y = matmul_bias_T(wmat, cols, b, apply_relu=relu, out_dtype=out_dtype)
    return y.reshape(cout, n, ho, wo)


def conv1x1_cnhw(x, w, b, relu=False, out_dtype=jnp.float32):
    """x: (Cin, N, H, W); w: (Cout, Cin, 1, 1)."""
    cin, n, h, wd = x.shape
    cout = w.shape[0]
    a = x.reshape(cin, n * h * wd).astype(jnp.bfloat16)
    wmat = w.reshape(cout, cin).astype(jnp.bfloat16)
    y = matmul_bias_T(wmat, a, b, apply_relu=relu, out_dtype=out_dtype)
    return y.reshape(cout, n, h, wd)


# ----------------------------------------------------------------------------
# Synthetic backbone + PoseEstimationAeGroup forward
# ----------------------------------------------------------------------------
def init_params(key, num_joints, hidden):
    ks = jax.random.split(key, 4)

    def w(k, shape, fan_in):
        return jax.random.normal(k, shape, jnp.float32) / np.sqrt(fan_in)

    return {
        "conv1_w": w(ks[0], (hidden, 3, 3, 3), 3 * 9),
        "conv1_b": jnp.zeros((hidden,), jnp.float32),
        "conv2_w": w(ks[1], (hidden, hidden, 3, 3), hidden * 9),
        "conv2_b": jnp.zeros((hidden,), jnp.float32),
        "head0_w": w(ks[2], (2 * num_joints, hidden, 1, 1), hidden),
        "head0_b": jnp.zeros((2 * num_joints,), jnp.float32),
        "head1_w": w(ks[3], (num_joints, hidden, 1, 1), hidden),
        "head1_b": jnp.zeros((num_joints,), jnp.float32),
    }


def backbone_forward(params, x_cnhw):
    # Intermediate activations kept in bf16 (MXU feed); heads output f32.
    f_half = conv3x3_s2_cnhw(x_cnhw, params["conv1_w"], params["conv1_b"],
                             relu=True, out_dtype=jnp.bfloat16)     # (hid, N, H/2, W/2)
    f_quarter = conv3x3_s2_cnhw(f_half, params["conv2_w"], params["conv2_b"],
                                relu=True, out_dtype=jnp.bfloat16)  # (hid, N, H/4, W/4)
    out0 = conv1x1_cnhw(f_quarter, params["head0_w"], params["head0_b"],
                        out_dtype=jnp.float32)                      # (2J, N, H/4, W/4)
    out1 = conv1x1_cnhw(f_half, params["head1_w"], params["head1_b"],
                        out_dtype=jnp.float32)                      # (J,  N, H/2, W/2)
    return [out0, out1], None


def pose_estimation_ae_group_forward(params, imgs, num_joints):
    """imgs: (N, C, H, W) NCHW (PyTorch layout).  Returns (heatmaps, tags) NCHW."""
    n, _, h_img, w_img = imgs.shape
    j = num_joints
    x = jnp.transpose(imgs, (1, 0, 2, 3))          # single transpose -> CNHW
    outputs, _ = backbone_forward(params, x)
    out0, out1 = outputs
    h0, w0 = out0.shape[2], out0.shape[3]          # stage-0 spatial (H/4, W/4)
    h1, w1 = out1.shape[2], out1.shape[3]          # last-stage spatial (H/2, W/2)

    # Compose interpolation operators at trace time:
    #   heatmap = proj((up(out0[:J]) + out1[:J]) / 2)
    #           = (0.5*Ph@Uh) @ out0[:J] @ (Pw@Uw)^T + (0.5*Ph) @ out1 @ Pw^T
    #   tag     = (Ph@Uh) @ out0[J:] @ (Pw@Uw)^T
    up_h = _bilinear_matrix(h1, h0)
    up_w = _bilinear_matrix(w1, w0)
    pr_h = _bilinear_matrix(h_img, h1)             # size_projected = (W, H) -> (H, W)
    pr_w = _bilinear_matrix(w_img, w1)
    num_heatmaps = 2.0
    a0 = jnp.asarray((pr_h @ up_h) / num_heatmaps)       # (H, h0)
    b0t = jnp.asarray((pr_w @ up_w).T)                   # (w0, W)
    a1 = jnp.asarray(pr_h / num_heatmaps)                # (H, h1)
    b1t = jnp.asarray(pr_w.T)                            # (w1, W)
    at = jnp.asarray(pr_h @ up_h)                        # (H, h0) (no 1/2 for tags)
    btt = b0t

    hm0 = out0[:j].reshape(j * n, h0, w0)                # contiguous CNHW slices
    hm1 = out1[:j].reshape(j * n, h1, w1)
    tg0 = out0[j:].reshape(j * n, h0, w0)

    hm = fused_avg_project(hm0, hm1, a0, b0t, a1, b1t)   # (J*N, H, W)
    tg = project(tg0, at, btt)                           # (J*N, H, W)

    heatmaps = [jnp.transpose(hm.reshape(j, n, h_img, w_img), (1, 0, 2, 3))]
    tags = [jnp.transpose(tg.reshape(j, n, h_img, w_img), (1, 0, 2, 3))]
    return heatmaps, tags


# ----------------------------------------------------------------------------
# Main
# ----------------------------------------------------------------------------
if __name__ == "__main__":
    num_joints = 4
    hidden = 8
    N, C, H, W = 2, 3, 32, 32

    key = jax.random.PRNGKey(0)
    k_img, k_par = jax.random.split(key)
    imgs = jax.random.normal(k_img, (N, C, H, W), jnp.float32)
    params = init_params(k_par, num_joints, hidden)

    fwd = jax.jit(functools.partial(pose_estimation_ae_group_forward,
                                    num_joints=num_joints))
    heatmaps, tags = fwd(params, imgs)
    heatmaps = [jax.block_until_ready(h) for h in heatmaps]
    tags = [jax.block_until_ready(t) for t in tags]

    # Shape / sanity checks (match PyTorch semantics).
    assert heatmaps[0].shape == (N, num_joints, H, W), heatmaps[0].shape
    assert tags[0].shape == (N, num_joints, H, W), tags[0].shape
    assert bool(jnp.all(jnp.isfinite(heatmaps[0])))
    assert bool(jnp.all(jnp.isfinite(tags[0])))

    # Light kernel self-consistency checks vs plain math.
    kw_, kx_, kb_ = jax.random.split(jax.random.PRNGKey(1), 3)
    wm = jax.random.normal(kw_, (8, 24), jnp.float32).astype(jnp.bfloat16)
    xm = jax.random.normal(kx_, (24, 256), jnp.float32).astype(jnp.bfloat16)
    bias = jax.random.normal(kb_, (8,), jnp.float32)
    got = np.asarray(matmul_bias_T(wm, xm, bias, apply_relu=True))
    ref = np.maximum(
        np.asarray(wm.astype(jnp.float32)) @ np.asarray(xm.astype(jnp.float32))
        + np.asarray(bias)[:, None], 0.0)
    np.testing.assert_allclose(got, ref, rtol=1e-3, atol=1e-3)

    xp_ = jax.random.normal(jax.random.PRNGKey(2), (6, 8, 8), jnp.float32)
    a_ = jnp.asarray(_bilinear_matrix(16, 8))
    bt_ = jnp.asarray(_bilinear_matrix(16, 8).T)
    got = np.asarray(project(xp_, a_, bt_))
    ref = np.einsum("oh,bhw,wp->bop",
                    np.asarray(a_), np.asarray(xp_), np.asarray(bt_))
    np.testing.assert_allclose(got, ref, rtol=1e-4, atol=1e-4)

    print("KERNEL_OK")
</pallas_src>

<mosaic_0001>
module attributes {stable_mosaic.version = 11 : i64} {
  func.func @_matmul_bias_kernel(%arg0: i32, %arg1: memref<8x27xbf16, #tpu.memory_space<vmem>>, %arg2: memref<27x512xbf16, #tpu.memory_space<vmem>>, %arg3: memref<8x1xf32, #tpu.memory_space<vmem>>, %arg4: memref<8x512xbf16, #tpu.memory_space<vmem>>) attributes {dimension_semantics = [#tpu.dimension_semantics<parallel>], iteration_bounds = array<i64: 1>, scalar_prefetch = 0 : i64, scratch_operands = 0 : i64, tpu.core_type = #tpu.core_type<tc>, window_params = [{pipeline_mode = #tpu.pipeline_mode<synchronous>, transform_indices = @transform_0, window_bounds = array<i64: 8, 27>}, {transform_indices = @transform_1, window_bounds = array<i64: 27, 512>}, {pipeline_mode = #tpu.pipeline_mode<synchronous>, transform_indices = @transform_2, window_bounds = array<i64: 8, 1>}, {transform_indices = @transform_3, window_bounds = array<i64: 8, 512>}]} {
    %c0 = arith.constant 0 : index
    %c0_0 = arith.constant 0 : index
    %0 = vector.load %arg1[%c0, %c0_0] : memref<8x27xbf16, #tpu.memory_space<vmem>>, vector<8x27xbf16>
    %c0_1 = arith.constant 0 : index
    %c0_2 = arith.constant 0 : index
    %1 = vector.load %arg2[%c0_1, %c0_2] : memref<27x512xbf16, #tpu.memory_space<vmem>>, vector<27x512xbf16>
    %cst = arith.constant dense<0.000000e+00> : vector<8x512xf32>
    %2 = tpu.matmul %0, %1, %cst {dimension_numbers = #tpu.dot_dimension_numbers<[1], [0], [0], [1], [0, 0, 1, 1], [], []>} : vector<8x27xbf16>, vector<27x512xbf16>, vector<8x512xf32> -> vector<8x512xf32>
    %c0_3 = arith.constant 0 : index
    %c0_4 = arith.constant 0 : index
    %3 = vector.load %arg3[%c0_3, %c0_4] : memref<8x1xf32, #tpu.memory_space<vmem>>, vector<8x1xf32>
    %4 = vector.broadcast %3 : vector<8x1xf32> to vector<8x512xf32>
    %5 = arith.addf %2, %4 : vector<8x512xf32>
    %cst_5 = arith.constant 0.000000e+00 : f32
    %6 = vector.broadcast %cst_5 : f32 to vector<8x512xf32>
    %7 = arith.maximumf %5, %6 : vector<8x512xf32>
    %8 = arith.truncf %7 : vector<8x512xf32> to vector<8x512xbf16>
    %c0_6 = arith.constant 0 : index
    %c0_7 = arith.constant 0 : index
    %9 = vector.load %arg4[%c0_6, %c0_7] : memref<8x512xbf16, #tpu.memory_space<vmem>>, vector<8x512xbf16>
    tpu.vector_store %arg4[%c0_6, %c0_7], %8 {strides = array<i32>} : memref<8x512xbf16, #tpu.memory_space<vmem>>, vector<8x512xbf16>,
    return
  }
  func.func @transform_0(%arg0: i32) -> (i32, i32) {
    %c0_i32 = arith.constant 0 : i32
    %c0_i32_0 = arith.constant 0 : i32
    %c0_i32_1 = arith.constant 0 : i32
    return %c0_i32, %c0_i32_0 : i32, i32
  }
  func.func @transform_1(%arg0: i32) -> (i32, i32) {
    %c0_i32 = arith.constant 0 : i32
    %c0_i32_0 = arith.constant 0 : i32
    return %c0_i32, %arg0 : i32, i32
  }
  func.func @transform_2(%arg0: i32) -> (i32, i32) {
    %c0_i32 = arith.constant 0 : i32
    %c0_i32_0 = arith.constant 0 : i32
    %c0_i32_1 = arith.constant 0 : i32
    return %c0_i32, %c0_i32_0 : i32, i32
  }
  func.func @transform_3(%arg0: i32) -> (i32, i32) {
    %c0_i32 = arith.constant 0 : i32
    %c0_i32_0 = arith.constant 0 : i32
    return %c0_i32, %arg0 : i32, i32
  }
}

module attributes {stable_mosaic.version = 11 : i64} {
  func.func @_matmul_bias_kernel(%arg0: i32, %arg1: memref<8x72xbf16, #tpu.memory_space<vmem>>, %arg2: memref<72x128xbf16, #tpu.memory_space<vmem>>, %arg3: memref<8x1xf32, #tpu.memory_space<vmem>>, %arg4: memref<8x128xbf16, #tpu.memory_space<vmem>>) attributes {dimension_semantics = [#tpu.dimension_semantics<parallel>], iteration_bounds = array<i64: 1>, scalar_prefetch = 0 : i64, scratch_operands = 0 : i64, tpu.core_type = #tpu.core_type<tc>, window_params = [{pipeline_mode = #tpu.pipeline_mode<synchronous>, transform_indices = @transform_0, window_bounds = array<i64: 8, 72>}, {transform_indices = @transform_1, window_bounds = array<i64: 72, 128>}, {pipeline_mode = #tpu.pipeline_mode<synchronous>, transform_indices = @transform_2, window_bounds = array<i64: 8, 1>}, {transform_indices = @transform_3, window_bounds = array<i64: 8, 128>}]} {
    %c0 = arith.constant 0 : index
    %c0_0 = arith.constant 0 : index
    %0 = vector.load %arg1[%c0, %c0_0] : memref<8x72xbf16, #tpu.memory_space<vmem>>, vector<8x72xbf16>
    %c0_1 = arith.constant 0 : index
    %c0_2 = arith.constant 0 : index
    %1 = vector.load %arg2[%c0_1, %c0_2] : memref<72x128xbf16, #tpu.memory_space<vmem>>, vector<72x128xbf16>
    %cst = arith.constant dense<0.000000e+00> : vector<8x128xf32>
    %2 = tpu.matmul %0, %1, %cst {dimension_numbers = #tpu.dot_dimension_numbers<[1], [0], [0], [1], [0, 0, 1, 1], [], []>} : vector<8x72xbf16>, vector<72x128xbf16>, vector<8x128xf32> -> vector<8x128xf32>
    %c0_3 = arith.constant 0 : index
    %c0_4 = arith.constant 0 : index
    %3 = vector.load %arg3[%c0_3, %c0_4] : memref<8x1xf32, #tpu.memory_space<vmem>>, vector<8x1xf32>
    %4 = vector.broadcast %3 : vector<8x1xf32> to vector<8x128xf32>
    %5 = arith.addf %2, %4 : vector<8x128xf32>
    %cst_5 = arith.constant 0.000000e+00 : f32
    %6 = vector.broadcast %cst_5 : f32 to vector<8x128xf32>
    %7 = arith.maximumf %5, %6 : vector<8x128xf32>
    %8 = arith.truncf %7 : vector<8x128xf32> to vector<8x128xbf16>
    %c0_6 = arith.constant 0 : index
    %c0_7 = arith.constant 0 : index
    %9 = vector.load %arg4[%c0_6, %c0_7] : memref<8x128xbf16, #tpu.memory_space<vmem>>, vector<8x128xbf16>
    tpu.vector_store %arg4[%c0_6, %c0_7], %8 {strides = array<i32>} : memref<8x128xbf16, #tpu.memory_space<vmem>>, vector<8x128xbf16>,
    return
  }
  func.func @transform_0(%arg0: i32) -> (i32, i32) {
    %c0_i32 = arith.constant 0 : i32
    %c0_i32_0 = arith.constant 0 : i32
    %c0_i32_1 = arith.constant 0 : i32
    return %c0_i32, %c0_i32_0 : i32, i32
  }
  func.func @transform_1(%arg0: i32) -> (i32, i32) {
    %c0_i32 = arith.constant 0 : i32
    %c0_i32_0 = arith.constant 0 : i32
    return %c0_i32, %arg0 : i32, i32
  }
  func.func @transform_2(%arg0: i32) -> (i32, i32) {
    %c0_i32 = arith.constant 0 : i32
    %c0_i32_0 = arith.constant 0 : i32
    %c0_i32_1 = arith.constant 0 : i32
    return %c0_i32, %c0_i32_0 : i32, i32
  }
  func.func @transform_3(%arg0: i32) -> (i32, i32) {
    %c0_i32 = arith.constant 0 : i32
    %c0_i32_0 = arith.constant 0 : i32
    return %c0_i32, %arg0 : i32, i32
  }
}

module attributes {stable_mosaic.version = 11 : i64} {
  func.func @_matmul_bias_kernel(%arg0: i32, %arg1: memref<8x8xbf16, #tpu.memory_space<vmem>>, %arg2: memref<8x128xbf16, #tpu.memory_space<vmem>>, %arg3: memref<8x1xf32, #tpu.memory_space<vmem>>, %arg4: memref<8x128xf32, #tpu.memory_space<vmem>>) attributes {dimension_semantics = [#tpu.dimension_semantics<parallel>], iteration_bounds = array<i64: 1>, scalar_prefetch = 0 : i64, scratch_operands = 0 : i64, tpu.core_type = #tpu.core_type<tc>, window_params = [{pipeline_mode = #tpu.pipeline_mode<synchronous>, transform_indices = @transform_0, window_bounds = array<i64: 8, 8>}, {transform_indices = @transform_1, window_bounds = array<i64: 8, 128>}, {pipeline_mode = #tpu.pipeline_mode<synchronous>, transform_indices = @transform_2, window_bounds = array<i64: 8, 1>}, {transform_indices = @transform_3, window_bounds = array<i64: 8, 128>}]} {
    %c0 = arith.constant 0 : index
    %c0_0 = arith.constant 0 : index
    %0 = vector.load %arg1[%c0, %c0_0] : memref<8x8xbf16, #tpu.memory_space<vmem>>, vector<8x8xbf16>
    %c0_1 = arith.constant 0 : index
    %c0_2 = arith.constant 0 : index
    %1 = vector.load %arg2[%c0_1, %c0_2] : memref<8x128xbf16, #tpu.memory_space<vmem>>, vector<8x128xbf16>
    %cst = arith.constant dense<0.000000e+00> : vector<8x128xf32>
    %2 = tpu.matmul %0, %1, %cst {dimension_numbers = #tpu.dot_dimension_numbers<[1], [0], [0], [1], [0, 0, 1, 1], [], []>} : vector<8x8xbf16>, vector<8x128xbf16>, vector<8x128xf32> -> vector<8x128xf32>
    %c0_3 = arith.constant 0 : index
    %c0_4 = arith.constant 0 : index
    %3 = vector.load %arg3[%c0_3, %c0_4] : memref<8x1xf32, #tpu.memory_space<vmem>>, vector<8x1xf32>
    %4 = vector.broadcast %3 : vector<8x1xf32> to vector<8x128xf32>
    %5 = arith.addf %2, %4 : vector<8x128xf32>
    %c0_5 = arith.constant 0 : index
    %c0_6 = arith.constant 0 : index
    %6 = vector.load %arg4[%c0_5, %c0_6] : memref<8x128xf32, #tpu.memory_space<vmem>>, vector<8x128xf32>
    tpu.vector_store %arg4[%c0_5, %c0_6], %5 {strides = array<i32>} : memref<8x128xf32, #tpu.memory_space<vmem>>, vector<8x128xf32>,
    return
  }
  func.func @transform_0(%arg0: i32) -> (i32, i32) {
    %c0_i32 = arith.constant 0 : i32
    %c0_i32_0 = arith.constant 0 : i32
    %c0_i32_1 = arith.constant 0 : i32
    return %c0_i32, %c0_i32_0 : i32, i32
  }
  func.func @transform_1(%arg0: i32) -> (i32, i32) {
    %c0_i32 = arith.constant 0 : i32
    %c0_i32_0 = arith.constant 0 : i32
    return %c0_i32, %arg0 : i32, i32
  }
  func.func @transform_2(%arg0: i32) -> (i32, i32) {
    %c0_i32 = arith.constant 0 : i32
    %c0_i32_0 = arith.constant 0 : i32
    %c0_i32_1 = arith.constant 0 : i32
    return %c0_i32, %c0_i32_0 : i32, i32
  }
  func.func @transform_3(%arg0: i32) -> (i32, i32) {
    %c0_i32 = arith.constant 0 : i32
    %c0_i32_0 = arith.constant 0 : i32
    return %c0_i32, %arg0 : i32, i32
  }
}

module attributes {stable_mosaic.version = 11 : i64} {
  func.func @_matmul_bias_kernel(%arg0: i32, %arg1: memref<4x8xbf16, #tpu.memory_space<vmem>>, %arg2: memref<8x512xbf16, #tpu.memory_space<vmem>>, %arg3: memref<4x1xf32, #tpu.memory_space<vmem>>, %arg4: memref<4x512xf32, #tpu.memory_space<vmem>>) attributes {dimension_semantics = [#tpu.dimension_semantics<parallel>], iteration_bounds = array<i64: 1>, scalar_prefetch = 0 : i64, scratch_operands = 0 : i64, tpu.core_type = #tpu.core_type<tc>, window_params = [{pipeline_mode = #tpu.pipeline_mode<synchronous>, transform_indices = @transform_0, window_bounds = array<i64: 4, 8>}, {transform_indices = @transform_1, window_bounds = array<i64: 8, 512>}, {pipeline_mode = #tpu.pipeline_mode<synchronous>, transform_indices = @transform_2, window_bounds = array<i64: 4, 1>}, {transform_indices = @transform_3, window_bounds = array<i64: 4, 512>}]} {
    %c0 = arith.constant 0 : index
    %c0_0 = arith.constant 0 : index
    %0 = vector.load %arg1[%c0, %c0_0] : memref<4x8xbf16, #tpu.memory_space<vmem>>, vector<4x8xbf16>
    %c0_1 = arith.constant 0 : index
    %c0_2 = arith.constant 0 : index
    %1 = vector.load %arg2[%c0_1, %c0_2] : memref<8x512xbf16, #tpu.memory_space<vmem>>, vector<8x512xbf16>
    %cst = arith.constant dense<0.000000e+00> : vector<4x512xf32>
    %2 = tpu.matmul %0, %1, %cst {dimension_numbers = #tpu.dot_dimension_numbers<[1], [0], [0], [1], [0, 0, 1, 1], [], []>} : vector<4x8xbf16>, vector<8x512xbf16>, vector<4x512xf32> -> vector<4x512xf32>
    %c0_3 = arith.constant 0 : index
    %c0_4 = arith.constant 0 : index
    %3 = vector.load %arg3[%c0_3, %c0_4] : memref<4x1xf32, #tpu.memory_space<vmem>>, vector<4x1xf32>
    %4 = vector.broadcast %3 : vector<4x1xf32> to vector<4x512xf32>
    %5 = arith.addf %2, %4 : vector<4x512xf32>
    %c0_5 = arith.constant 0 : index
    %c0_6 = arith.constant 0 : index
    %6 = vector.load %arg4[%c0_5, %c0_6] : memref<4x512xf32, #tpu.memory_space<vmem>>, vector<4x512xf32>
    tpu.vector_store %arg4[%c0_5, %c0_6], %5 {strides = array<i32>} : memref<4x512xf32, #tpu.memory_space<vmem>>, vector<4x512xf32>,
    return
  }
  func.func @transform_0(%arg0: i32) -> (i32, i32) {
    %c0_i32 = arith.constant 0 : i32
    %c0_i32_0 = arith.constant 0 : i32
    %c0_i32_1 = arith.constant 0 : i32
    return %c0_i32, %c0_i32_0 : i32, i32
  }
  func.func @transform_1(%arg0: i32) -> (i32, i32) {
    %c0_i32 = arith.constant 0 : i32
    %c0_i32_0 = arith.constant 0 : i32
    return %c0_i32, %arg0 : i32, i32
  }
  func.func @transform_2(%arg0: i32) -> (i32, i32) {
    %c0_i32 = arith.constant 0 : i32
    %c0_i32_0 = arith.constant 0 : i32
    %c0_i32_1 = arith.constant 0 : i32
    return %c0_i32, %c0_i32_0 : i32, i32
  }
  func.func @transform_3(%arg0: i32) -> (i32, i32) {
    %c0_i32 = arith.constant 0 : i32
    %c0_i32_0 = arith.constant 0 : i32
    return %c0_i32, %arg0 : i32, i32
  }
}

module attributes {stable_mosaic.version = 11 : i64} {
  func.func @_proj2_kernel(%arg0: i32, %arg1: memref<8x8x8xf32, #tpu.memory_space<vmem>>, %arg2: memref<8x16x16xf32, #tpu.memory_space<vmem>>, %arg3: memref<32x8xf32, #tpu.memory_space<vmem>>, %arg4: memref<8x32xf32, #tpu.memory_space<vmem>>, %arg5: memref<32x16xf32, #tpu.memory_space<vmem>>, %arg6: memref<16x32xf32, #tpu.memory_space<vmem>>, %arg7: memref<8x32x32xf32, #tpu.memory_space<vmem>>) attributes {dimension_semantics = [#tpu.dimension_semantics<arbitrary>], iteration_bounds = array<i64: 1>, scalar_prefetch = 0 : i64, scratch_operands = 0 : i64, tpu.core_type = #tpu.core_type<tc>, window_params = [{pipeline_mode = #tpu.pipeline_mode<synchronous>, transform_indices = @transform_0, window_bounds = array<i64: 8, 8, 8>}, {pipeline_mode = #tpu.pipeline_mode<synchronous>, transform_indices = @transform_1, window_bounds = array<i64: 8, 16, 16>}, {pipeline_mode = #tpu.pipeline_mode<synchronous>, transform_indices = @transform_2, window_bounds = array<i64: 32, 8>}, {pipeline_mode = #tpu.pipeline_mode<synchronous>, transform_indices = @transform_3, window_bounds = array<i64: 8, 32>}, {pipeline_mode = #tpu.pipeline_mode<synchronous>, transform_indices = @transform_4, window_bounds = array<i64: 32, 16>}, {pipeline_mode = #tpu.pipeline_mode<synchronous>, transform_indices = @transform_5, window_bounds = array<i64: 16, 32>}, {pipeline_mode = #tpu.pipeline_mode<synchronous>, transform_indices = @transform_6, window_bounds = array<i64: 8, 32, 32>}]} {
    %c0 = arith.constant 0 : index
    %c0_0 = arith.constant 0 : index
    %0 = vector.load %arg3[%c0, %c0_0] : memref<32x8xf32, #tpu.memory_space<vmem>>, vector<32x8xf32>
    %c0_1 = arith.constant 0 : index
    %c0_2 = arith.constant 0 : index
    %c0_3 = arith.constant 0 : index
    %1 = vector.load %arg1[%c0_1, %c0_2, %c0_3] : memref<8x8x8xf32, #tpu.memory_space<vmem>>, vector<1x8x8xf32>
    %2 = vector.shape_cast %1 : vector<1x8x8xf32> to vector<8x8xf32>
    %cst = arith.constant dense<0.000000e+00> : vector<32x8xf32>
    %3 = tpu.matmul %0, %2, %cst {dimension_numbers = #tpu.dot_dimension_numbers<[1], [0], [0], [1], [0, 0, 1, 1], [], []>} : vector<32x8xf32>, vector<8x8xf32>, vector<32x8xf32> -> vector<32x8xf32>
    %c0_4 = arith.constant 0 : index
    %c0_5 = arith.constant 0 : index
    %4 = vector.load %arg4[%c0_4, %c0_5] : memref<8x32xf32, #tpu.memory_space<vmem>>, vector<8x32xf32>
    %cst_6 = arith.constant dense<0.000000e+00> : vector<32x32xf32>
    %5 = tpu.matmul %3, %4, %cst_6 {dimension_numbers = #tpu.dot_dimension_numbers<[1], [0], [0], [1], [0, 0, 1, 1], [], []>} : vector<32x8xf32>, vector<8x32xf32>, vector<32x32xf32> -> vector<32x32xf32>
    %c0_7 = arith.constant 0 : index
    %c0_8 = arith.constant 0 : index
    %6 = vector.load %arg5[%c0_7, %c0_8] : memref<32x16xf32, #tpu.memory_space<vmem>>, vector<32x16xf32>
    %c0_9 = arith.constant 0 : index
    %c0_10 = arith.constant 0 : index
    %c0_11 = arith.constant 0 : index
    %7 = vector.load %arg2[%c0_9, %c0_10, %c0_11] : memref<8x16x16xf32, #tpu.memory_space<vmem>>, vector<1x16x16xf32>
    %8 = vector.shape_cast %7 : vector<1x16x16xf32> to vector<16x16xf32>
    %cst_12 = arith.constant dense<0.000000e+00> : vector<32x16xf32>
    %9 = tpu.matmul %6, %8, %cst_12 {dimension_numbers = #tpu.dot_dimension_numbers<[1], [0], [0], [1], [0, 0, 1, 1], [], []>} : vector<32x16xf32>, vector<16x16xf32>, vector<32x16xf32> -> vector<32x16xf32>
    %c0_13 = arith.constant 0 : index
    %c0_14 = arith.constant 0 : index
    %10 = vector.load %arg6[%c0_13, %c0_14] : memref<16x32xf32, #tpu.memory_space<vmem>>, vector<16x32xf32>
    %cst_15 = arith.constant dense<0.000000e+00> : vector<32x32xf32>
    %11 = tpu.matmul %9, %10, %cst_15 {dimension_numbers = #tpu.dot_dimension_numbers<[1], [0], [0], [1], [0, 0, 1, 1], [], []>} : vector<32x16xf32>, vector<16x32xf32>, vector<32x32xf32> -> vector<32x32xf32>
    %12 = arith.addf %5, %11 : vector<32x32xf32>
    %c0_16 = arith.constant 0 : index
    %c0_17 = arith.constant 0 : index
    %c0_18 = arith.constant 0 : index
    %13 = vector.load %arg7[%c0_16, %c0_17, %c0_18] : memref<8x32x32xf32, #tpu.memory_space<vmem>>, vector<1x32x32xf32>
    %14 = vector.shape_cast %13 : vector<1x32x32xf32> to vector<32x32xf32>
    %15 = vector.shape_cast %12 : vector<32x32xf32> to vector<1x32x32xf32>
    tpu.vector_store %arg7[%c0_16, %c0_17, %c0_18], %15 {strides = array<i32>} : memref<8x32x32xf32, #tpu.memory_space<vmem>>, vector<1x32x32xf32>,
    %c0_19 = arith.constant 0 : index
    %c0_20 = arith.constant 0 : index
    %16 = vector.load %arg3[%c0_19, %c0_20] : memref<32x8xf32, #tpu.memory_space<vmem>>, vector<32x8xf32>
    %c1 = arith.constant 1 : index
    %c0_21 = arith.constant 0 : index
    %c0_22 = arith.constant 0 : index
    %17 = vector.load %arg1[%c1, %c0_21, %c0_22] : memref<8x8x8xf32, #tpu.memory_space<vmem>>, vector<1x8x8xf32>
    %18 = vector.shape_cast %17 : vector<1x8x8xf32> to vector<8x8xf32>
    %cst_23 = arith.constant dense<0.000000e+00> : vector<32x8xf32>
    %19 = tpu.matmul %16, %18, %cst_23 {dimension_numbers = #tpu.dot_dimension_numbers<[1], [0], [0], [1], [0, 0, 1, 1], [], []>} : vector<32x8xf32>, vector<8x8xf32>, vector<32x8xf32> -> vector<32x8xf32>
    %c0_24 = arith.constant 0 : index
    %c0_25 = arith.constant 0 : index
    %20 = vector.load %arg4[%c0_24, %c0_25] : memref<8x32xf32, #tpu.memory_space<vmem>>, vector<8x32xf32>
    %cst_26 = arith.constant dense<0.000000e+00> : vector<32x32xf32>
    %21 = tpu.matmul %19, %20, %cst_26 {dimension_numbers = #tpu.dot_dimension_numbers<[1], [0], [0], [1], [0, 0, 1, 1], [], []>} : vector<32x8xf32>, vector<8x32xf32>, vector<32x32xf32> -> vector<32x32xf32>
    %c0_27 = arith.constant 0 : index
    %c0_28 = arith.constant 0 : index
    %22 = vector.load %arg5[%c0_27, %c0_28] : memref<32x16xf32, #tpu.memory_space<vmem>>, vector<32x16xf32>
    %c1_29 = arith.constant 1 : index
    %c0_30 = arith.constant 0 : index
    %c0_31 = arith.constant 0 : index
    %23 = vector.load %arg2[%c1_29, %c0_30, %c0_31] : memref<8x16x16xf32, #tpu.memory_space<vmem>>, vector<1x16x16xf32>
    %24 = vector.shape_cast %23 : vector<1x16x16xf32> to vector<16x16xf32>
    %cst_32 = arith.constant dense<0.000000e+00> : vector<32x16xf32>
    %25 = tpu.matmul %22, %24, %cst_32 {dimension_numbers = #tpu.dot_dimension_numbers<[1], [0], [0], [1], [0, 0, 1, 1], [], []>} : vector<32x16xf32>, vector<16x16xf32>, vector<32x16xf32> -> vector<32x16xf32>
    %c0_33 = arith.constant 0 : index
    %c0_34 = arith.constant 0 : index
    %26 = vector.load %arg6[%c0_33, %c0_34] : memref<16x32xf32, #tpu.memory_space<vmem>>, vector<16x32xf32>
    %cst_35 = arith.constant dense<0.000000e+00> : vector<32x32xf32>
    %27 = tpu.matmul %25, %26, %cst_35 {dimension_numbers = #tpu.dot_dimension_numbers<[1], [0], [0], [1], [0, 0, 1, 1], [], []>} : vector<32x16xf32>, vector<16x32xf32>, vector<32x32xf32> -> vector<32x32xf32>
    %28 = arith.addf %21, %27 : vector<32x32xf32>
    %c1_36 = arith.constant 1 : index
    %c0_37 = arith.constant 0 : index
    %c0_38 = arith.constant 0 : index
    %29 = vector.load %arg7[%c1_36, %c0_37, %c0_38] : memref<8x32x32xf32, #tpu.memory_space<vmem>>, vector<1x32x32xf32>
    %30 = vector.shape_cast %29 : vector<1x32x32xf32> to vector<32x32xf32>
    %31 = vector.shape_cast %28 : vector<32x32xf32> to vector<1x32x32xf32>
    tpu.vector_store %arg7[%c1_36, %c0_37, %c0_38], %31 {strides = array<i32>} : memref<8x32x32xf32, #tpu.memory_space<vmem>>, vector<1x32x32xf32>,
    %c0_39 = arith.constant 0 : index
    %c0_40 = arith.constant 0 : index
    %32 = vector.load %arg3[%c0_39, %c0_40] : memref<32x8xf32, #tpu.memory_space<vmem>>, vector<32x8xf32>
    %c2 = arith.constant 2 : index
    %c0_41 = arith.constant 0 : index
    %c0_42 = arith.constant 0 : index
    %33 = vector.load %arg1[%c2, %c0_41, %c0_42] : memref<8x8x8xf32, #tpu.memory_space<vmem>>, vector<1x8x8xf32>
    %34 = vector.shape_cast %33 : vector<1x8x8xf32> to vector<8x8xf32>
    %cst_43 = arith.constant dense<0.000000e+00> : vector<32x8xf32>
    %35 = tpu.matmul %32, %34, %cst_43 {dimension_numbers = #tpu.dot_dimension_numbers<[1], [0], [0], [1], [0, 0, 1, 1], [], []>} : vector<32x8xf32>, vector<8x8xf32>, vector<32x8xf32> -> vector<32x8xf32>
    %c0_44 = arith.constant 0 : index
    %c0_45 = arith.constant 0 : index
    %36 = vector.load %arg4[%c0_44, %c0_45] : memref<8x32xf32, #tpu.memory_space<vmem>>, vector<8x32xf32>
    %cst_46 = arith.constant dense<0.000000e+00> : vector<32x32xf32>
    %37 = tpu.matmul %35, %36, %cst_46 {dimension_numbers = #tpu.dot_dimension_numbers<[1], [0], [0], [1], [0, 0, 1, 1], [], []>} : vector<32x8xf32>, vector<8x32xf32>, vector<32x32xf32> -> vector<32x32xf32>
    %c0_47 = arith.constant 0 : index
    %c0_48 = arith.constant 0 : index
    %38 = vector.load %arg5[%c0_47, %c0_48] : memref<32x16xf32, #tpu.memory_space<vmem>>, vector<32x16xf32>
    %c2_49 = arith.constant 2 : index
    %c0_50 = arith.constant 0 : index
    %c0_51 = arith.constant 0 : index
    %39 = vector.load %arg2[%c2_49, %c0_50, %c0_51] : memref<8x16x16xf32, #tpu.memory_space<vmem>>, vector<1x16x16xf32>
    %40 = vector.shape_cast %39 : vector<1x16x16xf32> to vector<16x16xf32>
    %cst_52 = arith.constant dense<0.000000e+00> : vector<32x16xf32>
    %41 = tpu.matmul %38, %40, %cst_52 {dimension_numbers = #tpu.dot_dimension_numbers<[1], [0], [0], [1], [0, 0, 1, 1], [], []>} : vector<32x16xf32>, vector<16x16xf32>, vector<32x16xf32> -> vector<32x16xf32>
    %c0_53 = arith.constant 0 : index
    %c0_54 = arith.constant 0 : index
    %42 = vector.load %arg6[%c0_53, %c0_54] : memref<16x32xf32, #tpu.memory_space<vmem>>, vector<16x32xf32>
    %cst_55 = arith.constant dense<0.000000e+00> : vector<32x32xf32>
    %43 = tpu.matmul %41, %42, %cst_55 {dimension_numbers = #tpu.dot_dimension_numbers<[1], [0], [0], [1], [0, 0, 1, 1], [], []>} : vector<32x16xf32>, vector<16x32xf32>, vector<32x32xf32> -> vector<32x32xf32>
    %44 = arith.addf %37, %43 : vector<32x32xf32>
    %c2_56 = arith.constant 2 : index
    %c0_57 = arith.constant 0 : index
    %c0_58 = arith.constant 0 : index
    %45 = vector.load %arg7[%c2_56, %c0_57, %c0_58] : memref<8x32x32xf32, #tpu.memory_space<vmem>>, vector<1x32x32xf32>
    %46 = vector.shape_cast %45 : vector<1x32x32xf32> to vector<32x32xf32>
    %47 = vector.shape_cast %44 : vector<32x32xf32> to vector<1x32x32xf32>
    tpu.vector_store %arg7[%c2_56, %c0_57, %c0_58], %47 {strides = array<i32>} : memref<8x32x32xf32, #tpu.memory_space<vmem>>, vector<1x32x32xf32>,
    %c0_59 = arith.constant 0 : index
    %c0_60 = arith.constant 0 : index
    %48 = vector.load %arg3[%c0_59, %c0_60] : memref<32x8xf32, #tpu.memory_space<vmem>>, vector<32x8xf32>
    %c3 = arith.constant 3 : index
    %c0_61 = arith.constant 0 : index
    %c0_62 = arith.constant 0 : index
    %49 = vector.load %arg1[%c3, %c0_61, %c0_62] : memref<8x8x8xf32, #tpu.memory_space<vmem>>, vector<1x8x8xf32>
    %50 = vector.shape_cast %49 : vector<1x8x8xf32> to vector<8x8xf32>
    %cst_63 = arith.constant dense<0.000000e+00> : vector<32x8xf32>
    %51 = tpu.matmul %48, %50, %cst_63 {dimension_numbers = #tpu.dot_dimension_numbers<[1], [0], [0], [1], [0, 0, 1, 1], [], []>} : vector<32x8xf32>, vector<8x8xf32>, vector<32x8xf32> -> vector<32x8xf32>
    %c0_64 = arith.constant 0 : index
    %c0_65 = arith.constant 0 : index
    %52 = vector.load %arg4[%c0_64, %c0_65] : memref<8x32xf32, #tpu.memory_space<vmem>>, vector<8x32xf32>
    %cst_66 = arith.constant dense<0.000000e+00> : vector<32x32xf32>
    %53 = tpu.matmul %51, %52, %cst_66 {dimension_numbers = #tpu.dot_dimension_numbers<[1], [0], [0], [1], [0, 0, 1, 1], [], []>} : vector<32x8xf32>, vector<8x32xf32>, vector<32x32xf32> -> vector<32x32xf32>
    %c0_67 = arith.constant 0 : index
    %c0_68 = arith.constant 0 : index
    %54 = vector.load %arg5[%c0_67, %c0_68] : memref<32x16xf32, #tpu.memory_space<vmem>>, vector<32x16xf32>
    %c3_69 = arith.constant 3 : index
    %c0_70 = arith.constant 0 : index
    %c0_71 = arith.constant 0 : index
    %55 = vector.load %arg2[%c3_69, %c0_70, %c0_71] : memref<8x16x16xf32, #tpu.memory_space<vmem>>, vector<1x16x16xf32>
    %56 = vector.shape_cast %55 : vector<1x16x16xf32> to vector<16x16xf32>
    %cst_72 = arith.constant dense<0.000000e+00> : vector<32x16xf32>
    %57 = tpu.matmul %54, %56, %cst_72 {dimension_numbers = #tpu.dot_dimension_numbers<[1], [0], [0], [1], [0, 0, 1, 1], [], []>} : vector<32x16xf32>, vector<16x16xf32>, vector<32x16xf32> -> vector<32x16xf32>
    %c0_73 = arith.constant 0 : index
    %c0_74 = arith.constant 0 : index
    %58 = vector.load %arg6[%c0_73, %c0_74] : memref<16x32xf32, #tpu.memory_space<vmem>>, vector<16x32xf32>
    %cst_75 = arith.constant dense<0.000000e+00> : vector<32x32xf32>
    %59 = tpu.matmul %57, %58, %cst_75 {dimension_numbers = #tpu.dot_dimension_numbers<[1], [0], [0], [1], [0, 0, 1, 1], [], []>} : vector<32x16xf32>, vector<16x32xf32>, vector<32x32xf32> -> vector<32x32xf32>
    %60 = arith.addf %53, %59 : vector<32x32xf32>
    %c3_76 = arith.constant 3 : index
    %c0_77 = arith.constant 0 : index
    %c0_78 = arith.constant 0 : index
    %61 = vector.load %arg7[%c3_76, %c0_77, %c0_78] : memref<8x32x32xf32, #tpu.memory_space<vmem>>, vector<1x32x32xf32>
    %62 = vector.shape_cast %61 : vector<1x32x32xf32> to vector<32x32xf32>
    %63 = vector.shape_cast %60 : vector<32x32xf32> to vector<1x32x32xf32>
    tpu.vector_store %arg7[%c3_76, %c0_77, %c0_78], %63 {strides = array<i32>} : memref<8x32x32xf32, #tpu.memory_space<vmem>>, vector<1x32x32xf32>,
    %c0_79 = arith.constant 0 : index
    %c0_80 = arith.constant 0 : index
    %64 = vector.load %arg3[%c0_79, %c0_80] : memref<32x8xf32, #tpu.memory_space<vmem>>, vector<32x8xf32>
    %c4 = arith.constant 4 : index
    %c0_81 = arith.constant 0 : index
    %c0_82 = arith.constant 0 : index
    %65 = vector.load %arg1[%c4, %c0_81, %c0_82] : memref<8x8x8xf32, #tpu.memory_space<vmem>>, vector<1x8x8xf32>
    %66 = vector.shape_cast %65 : vector<1x8x8xf32> to vector<8x8xf32>
    %cst_83 = arith.constant dense<0.000000e+00> : vector<32x8xf32>
    %67 = tpu.matmul %64, %66, %cst_83 {dimension_numbers = #tpu.dot_dimension_numbers<[1], [0], [0], [1], [0, 0, 1, 1], [], []>} : vector<32x8xf32>, vector<8x8xf32>, vector<32x8xf32> -> vector<32x8xf32>
    %c0_84 = arith.constant 0 : index
    %c0_85 = arith.constant 0 : index
    %68 = vector.load %arg4[%c0_84, %c0_85] : memref<8x32xf32, #tpu.memory_space<vmem>>, vector<8x32xf32>
    %cst_86 = arith.constant dense<0.000000e+00> : vector<32x32xf32>
    %69 = tpu.matmul %67, %68, %cst_86 {dimension_numbers = #tpu.dot_dimension_numbers<[1], [0], [0], [1], [0, 0, 1, 1], [], []>} : vector<32x8xf32>, vector<8x32xf32>, vector<32x32xf32> -> vector<32x32xf32>
    %c0_87 = arith.constant 0 : index
    %c0_88 = arith.constant 0 : index
    %70 = vector.load %arg5[%c0_87, %c0_88] : memref<32x16xf32, #tpu.memory_space<vmem>>, vector<32x16xf32>
    %c4_89 = arith.constant 4 : index
    %c0_90 = arith.constant 0 : index
    %c0_91 = arith.constant 0 : index
    %71 = vector.load %arg2[%c4_89, %c0_90, %c0_91] : memref<8x16x16xf32, #tpu.memory_space<vmem>>, vector<1x16x16xf32>
    %72 = vector.shape_cast %71 : vector<1x16x16xf32> to vector<16x16xf32>
    %cst_92 = arith.constant dense<0.000000e+00> : vector<32x16xf32>
    %73 = tpu.matmul %70, %72, %cst_92 {dimension_numbers = #tpu.dot_dimension_numbers<[1], [0], [0], [1], [0, 0, 1, 1], [], []>} : vector<32x16xf32>, vector<16x16xf32>, vector<32x16xf32> -> vector<32x16xf32>
    %c0_93 = arith.constant 0 : index
    %c0_94 = arith.constant 0 : index
    %74 = vector.load %arg6[%c0_93, %c0_94] : memref<16x32xf32, #tpu.memory_space<vmem>>, vector<16x32xf32>
    %cst_95 = arith.constant dense<0.000000e+00> : vector<32x32xf32>
    %75 = tpu.matmul %73, %74, %cst_95 {dimension_numbers = #tpu.dot_dimension_numbers<[1], [0], [0], [1], [0, 0, 1, 1], [], []>} : vector<32x16xf32>, vector<16x32xf32>, vector<32x32xf32> -> vector<32x32xf32>
    %76 = arith.addf %69, %75 : vector<32x32xf32>
    %c4_96 = arith.constant 4 : index
    %c0_97 = arith.constant 0 : index
    %c0_98 = arith.constant 0 : index
    %77 = vector.load %arg7[%c4_96, %c0_97, %c0_98] : memref<8x32x32xf32, #tpu.memory_space<vmem>>, vector<1x32x32xf32>
    %78 = vector.shape_cast %77 : vector<1x32x32xf32> to vector<32x32xf32>
    %79 = vector.shape_cast %76 : vector<32x32xf32> to vector<1x32x32xf32>
    tpu.vector_store %arg7[%c4_96, %c0_97, %c0_98], %79 {strides = array<i32>} : memref<8x32x32xf32, #tpu.memory_space<vmem>>, vector<1x32x32xf32>,
    %c0_99 = arith.constant 0 : index
    %c0_100 = arith.constant 0 : index
    %80 = vector.load %arg3[%c0_99, %c0_100] : memref<32x8xf32, #tpu.memory_space<vmem>>, vector<32x8xf32>
    %c5 = arith.constant 5 : index
    %c0_101 = arith.constant 0 : index
    %c0_102 = arith.constant 0 : index
    %81 = vector.load %arg1[%c5, %c0_101, %c0_102] : memref<8x8x8xf32, #tpu.memory_space<vmem>>, vector<1x8x8xf32>
    %82 = vector.shape_cast %81 : vector<1x8x8xf32> to vector<8x8xf32>
    %cst_103 = arith.constant dense<0.000000e+00> : vector<32x8xf32>
    %83 = tpu.matmul %80, %82, %cst_103 {dimension_numbers = #tpu.dot_dimension_numbers<[1], [0], [0], [1], [0, 0, 1, 1], [], []>} : vector<32x8xf32>, vector<8x8xf32>, vector<32x8xf32> -> vector<32x8xf32>
    %c0_104 = arith.constant 0 : index
    %c0_105 = arith.constant 0 : index
    %84 = vector.load %arg4[%c0_104, %c0_105] : memref<8x32xf32, #tpu.memory_space<vmem>>, vector<8x32xf32>
    %cst_106 = arith.constant dense<0.000000e+00> : vector<32x32xf32>
    %85 = tpu.matmul %83, %84, %cst_106 {dimension_numbers = #tpu.dot_dimension_numbers<[1], [0], [0], [1], [0, 0, 1, 1], [], []>} : vector<32x8xf32>, vector<8x32xf32>, vector<32x32xf32> -> vector<32x32xf32>
    %c0_107 = arith.constant 0 : index
    %c0_108 = arith.constant 0 : index
    %86 = vector.load %arg5[%c0_107, %c0_108] : memref<32x16xf32, #tpu.memory_space<vmem>>, vector<32x16xf32>
    %c5_109 = arith.constant 5 : index
    %c0_110 = arith.constant 0 : index
    %c0_111 = arith.constant 0 : index
    %87 = vector.load %arg2[%c5_109, %c0_110, %c0_111] : memref<8x16x16xf32, #tpu.memory_space<vmem>>, vector<1x16x16xf32>
    %88 = vector.shape_cast %87 : vector<1x16x16xf32> to vector<16x16xf32>
    %cst_112 = arith.constant dense<0.000000e+00> : vector<32x16xf32>
    %89 = tpu.matmul %86, %88, %cst_112 {dimension_numbers = #tpu.dot_dimension_numbers<[1], [0], [0], [1], [0, 0, 1, 1], [], []>} : vector<32x16xf32>, vector<16x16xf32>, vector<32x16xf32> -> vector<32x16xf32>
    %c0_113 = arith.constant 0 : index
    %c0_114 = arith.constant 0 : index
    %90 = vector.load %arg6[%c0_113, %c0_114] : memref<16x32xf32, #tpu.memory_space<vmem>>, vector<16x32xf32>
    %cst_115 = arith.constant dense<0.000000e+00> : vector<32x32xf32>
    %91 = tpu.matmul %89, %90, %cst_115 {dimension_numbers = #tpu.dot_dimension_numbers<[1], [0], [0], [1], [0, 0, 1, 1], [], []>} : vector<32x16xf32>, vector<16x32xf32>, vector<32x32xf32> -> vector<32x32xf32>
    %92 = arith.addf %85, %91 : vector<32x32xf32>
    %c5_116 = arith.constant 5 : index
    %c0_117 = arith.constant 0 : index
    %c0_118 = arith.constant 0 : index
    %93 = vector.load %arg7[%c5_116, %c0_117, %c0_118] : memref<8x32x32xf32, #tpu.memory_space<vmem>>, vector<1x32x32xf32>
    %94 = vector.shape_cast %93 : vector<1x32x32xf32> to vector<32x32xf32>
    %95 = vector.shape_cast %92 : vector<32x32xf32> to vector<1x32x32xf32>
    tpu.vector_store %arg7[%c5_116, %c0_117, %c0_118], %95 {strides = array<i32>} : memref<8x32x32xf32, #tpu.memory_space<vmem>>, vector<1x32x32xf32>,
    %c0_119 = arith.constant 0 : index
    %c0_120 = arith.constant 0 : index
    %96 = vector.load %arg3[%c0_119, %c0_120] : memref<32x8xf32, #tpu.memory_space<vmem>>, vector<32x8xf32>
    %c6 = arith.constant 6 : index
    %c0_121 = arith.constant 0 : index
    %c0_122 = arith.constant 0 : index
    %97 = vector.load %arg1[%c6, %c0_121, %c0_122] : memref<8x8x8xf32, #tpu.memory_space<vmem>>, vector<1x8x8xf32>
    %98 = vector.shape_cast %97 : vector<1x8x8xf32> to vector<8x8xf32>
    %cst_123 = arith.constant dense<0.000000e+00> : vector<32x8xf32>
    %99 = tpu.matmul %96, %98, %cst_123 {dimension_numbers = #tpu.dot_dimension_numbers<[1], [0], [0], [1], [0, 0, 1, 1], [], []>} : vector<32x8xf32>, vector<8x8xf32>, vector<32x8xf32> -> vector<32x8xf32>
    %c0_124 = arith.constant 0 : index
    %c0_125 = arith.constant 0 : index
    %100 = vector.load %arg4[%c0_124, %c0_125] : memref<8x32xf32, #tpu.memory_space<vmem>>, vector<8x32xf32>
    %cst_126 = arith.constant dense<0.000000e+00> : vector<32x32xf32>
    %101 = tpu.matmul %99, %100, %cst_126 {dimension_numbers = #tpu.dot_dimension_numbers<[1], [0], [0], [1], [0, 0, 1, 1], [], []>} : vector<32x8xf32>, vector<8x32xf32>, vector<32x32xf32> -> vector<32x32xf32>
    %c0_127 = arith.constant 0 : index
    %c0_128 = arith.constant 0 : index
    %102 = vector.load %arg5[%c0_127, %c0_128] : memref<32x16xf32, #tpu.memory_space<vmem>>, vector<32x16xf32>
    %c6_129 = arith.constant 6 : index
    %c0_130 = arith.constant 0 : index
    %c0_131 = arith.constant 0 : index
    %103 = vector.load %arg2[%c6_129, %c0_130, %c0_131] : memref<8x16x16xf32, #tpu.memory_space<vmem>>, vector<1x16x16xf32>
    %104 = vector.shape_cast %103 : vector<1x16x16xf32> to vector<16x16xf32>
    %cst_132 = arith.constant dense<0.000000e+00> : vector<32x16xf32>
    %105 = tpu.matmul %102, %104, %cst_132 {dimension_numbers = #tpu.dot_dimension_numbers<[1], [0], [0], [1], [0, 0, 1, 1], [], []>} : vector<32x16xf32>, vector<16x16xf32>, vector<32x16xf32> -> vector<32x16xf32>
    %c0_133 = arith.constant 0 : index
    %c0_134 = arith.constant 0 : index
    %106 = vector.load %arg6[%c0_133, %c0_134] : memref<16x32xf32, #tpu.memory_space<vmem>>, vector<16x32xf32>
    %cst_135 = arith.constant dense<0.000000e+00> : vector<32x32xf32>
    %107 = tpu.matmul %105, %106, %cst_135 {dimension_numbers = #tpu.dot_dimension_numbers<[1], [0], [0], [1], [0, 0, 1, 1], [], []>} : vector<32x16xf32>, vector<16x32xf32>, vector<32x32xf32> -> vector<32x32xf32>
    %108 = arith.addf %101, %107 : vector<32x32xf32>
    %c6_136 = arith.constant 6 : index
    %c0_137 = arith.constant 0 : index
    %c0_138 = arith.constant 0 : index
    %109 = vector.load %arg7[%c6_136, %c0_137, %c0_138] : memref<8x32x32xf32, #tpu.memory_space<vmem>>, vector<1x32x32xf32>
    %110 = vector.shape_cast %109 : vector<1x32x32xf32> to vector<32x32xf32>
    %111 = vector.shape_cast %108 : vector<32x32xf32> to vector<1x32x32xf32>
    tpu.vector_store %arg7[%c6_136, %c0_137, %c0_138], %111 {strides = array<i32>} : memref<8x32x32xf32, #tpu.memory_space<vmem>>, vector<1x32x32xf32>,
    %c0_139 = arith.constant 0 : index
    %c0_140 = arith.constant 0 : index
    %112 = vector.load %arg3[%c0_139, %c0_140] : memref<32x8xf32, #tpu.memory_space<vmem>>, vector<32x8xf32>
    %c7 = arith.constant 7 : index
    %c0_141 = arith.constant 0 : index
    %c0_142 = arith.constant 0 : index
    %113 = vector.load %arg1[%c7, %c0_141, %c0_142] : memref<8x8x8xf32, #tpu.memory_space<vmem>>, vector<1x8x8xf32>
    %114 = vector.shape_cast %113 : vector<1x8x8xf32> to vector<8x8xf32>
    %cst_143 = arith.constant dense<0.000000e+00> : vector<32x8xf32>
    %115 = tpu.matmul %112, %114, %cst_143 {dimension_numbers = #tpu.dot_dimension_numbers<[1], [0], [0], [1], [0, 0, 1, 1], [], []>} : vector<32x8xf32>, vector<8x8xf32>, vector<32x8xf32> -> vector<32x8xf32>
    %c0_144 = arith.constant 0 : index
    %c0_145 = arith.constant 0 : index
    %116 = vector.load %arg4[%c0_144, %c0_145] : memref<8x32xf32, #tpu.memory_space<vmem>>, vector<8x32xf32>
    %cst_146 = arith.constant dense<0.000000e+00> : vector<32x32xf32>
    %117 = tpu.matmul %115, %116, %cst_146 {dimension_numbers = #tpu.dot_dimension_numbers<[1], [0], [0], [1], [0, 0, 1, 1], [], []>} : vector<32x8xf32>, vector<8x32xf32>, vector<32x32xf32> -> vector<32x32xf32>
    %c0_147 = arith.constant 0 : index
    %c0_148 = arith.constant 0 : index
    %118 = vector.load %arg5[%c0_147, %c0_148] : memref<32x16xf32, #tpu.memory_space<vmem>>, vector<32x16xf32>
    %c7_149 = arith.constant 7 : index
    %c0_150 = arith.constant 0 : index
    %c0_151 = arith.constant 0 : index
    %119 = vector.load %arg2[%c7_149, %c0_150, %c0_151] : memref<8x16x16xf32, #tpu.memory_space<vmem>>, vector<1x16x16xf32>
    %120 = vector.shape_cast %119 : vector<1x16x16xf32> to vector<16x16xf32>
    %cst_152 = arith.constant dense<0.000000e+00> : vector<32x16xf32>
    %121 = tpu.matmul %118, %120, %cst_152 {dimension_numbers = #tpu.dot_dimension_numbers<[1], [0], [0], [1], [0, 0, 1, 1], [], []>} : vector<32x16xf32>, vector<16x16xf32>, vector<32x16xf32> -> vector<32x16xf32>
    %c0_153 = arith.constant 0 : index
    %c0_154 = arith.constant 0 : index
    %122 = vector.load %arg6[%c0_153, %c0_154] : memref<16x32xf32, #tpu.memory_space<vmem>>, vector<16x32xf32>
    %cst_155 = arith.constant dense<0.000000e+00> : vector<32x32xf32>
    %123 = tpu.matmul %121, %122, %cst_155 {dimension_numbers = #tpu.dot_dimension_numbers<[1], [0], [0], [1], [0, 0, 1, 1], [], []>} : vector<32x16xf32>, vector<16x32xf32>, vector<32x32xf32> -> vector<32x32xf32>
    %124 = arith.addf %117, %123 : vector<32x32xf32>
    %c7_156 = arith.constant 7 : index
    %c0_157 = arith.constant 0 : index
    %c0_158 = arith.constant 0 : index
    %125 = vector.load %arg7[%c7_156, %c0_157, %c0_158] : memref<8x32x32xf32, #tpu.memory_space<vmem>>, vector<1x32x32xf32>
    %126 = vector.shape_cast %125 : vector<1x32x32xf32> to vector<32x32xf32>
    %127 = vector.shape_cast %124 : vector<32x32xf32> to vector<1x32x32xf32>
    tpu.vector_store %arg7[%c7_156, %c0_157, %c0_158], %127 {strides = array<i32>} : memref<8x32x32xf32, #tpu.memory_space<vmem>>, vector<1x32x32xf32>,
    return
  }
  func.func @transform_0(%arg0: i32) -> (i32, i32, i32) {
    %c0_i32 = arith.constant 0 : i32
    %c0_i32_0 = arith.constant 0 : i32
    %c0_i32_1 = arith.constant 0 : i32
    %c0_i32_2 = arith.constant 0 : i32
    return %c0_i32, %c0_i32_0, %c0_i32_1 : i32, i32, i32
  }
  func.func @transform_1(%arg0: i32) -> (i32, i32, i32) {
    %c0_i32 = arith.constant 0 : i32
    %c0_i32_0 = arith.constant 0 : i32
    %c0_i32_1 = arith.constant 0 : i32
    %c0_i32_2 = arith.constant 0 : i32
    return %c0_i32, %c0_i32_0, %c0_i32_1 : i32, i32, i32
  }
  func.func @transform_2(%arg0: i32) -> (i32, i32) {
    %c0_i32 = arith.constant 0 : i32
    %c0_i32_0 = arith.constant 0 : i32
    %c0_i32_1 = arith.constant 0 : i32
    return %c0_i32, %c0_i32_0 : i32, i32
  }
  func.func @transform_3(%arg0: i32) -> (i32, i32) {
    %c0_i32 = arith.constant 0 : i32
    %c0_i32_0 = arith.constant 0 : i32
    %c0_i32_1 = arith.constant 0 : i32
    return %c0_i32, %c0_i32_0 : i32, i32
  }
  func.func @transform_4(%arg0: i32) -> (i32, i32) {
    %c0_i32 = arith.constant 0 : i32
    %c0_i32_0 = arith.constant 0 : i32
    %c0_i32_1 = arith.constant 0 : i32
    return %c0_i32, %c0_i32_0 : i32, i32
  }
  func.func @transform_5(%arg0: i32) -> (i32, i32) {
    %c0_i32 = arith.constant 0 : i32
    %c0_i32_0 = arith.constant 0 : i32
    %c0_i32_1 = arith.constant 0 : i32
    return %c0_i32, %c0_i32_0 : i32, i32
  }
  func.func @transform_6(%arg0: i32) -> (i32, i32, i32) {
    %c0_i32 = arith.constant 0 : i32
    %c0_i32_0 = arith.constant 0 : i32
    %c0_i32_1 = arith.constant 0 : i32
    %c0_i32_2 = arith.constant 0 : i32
    return %c0_i32, %c0_i32_0, %c0_i32_1 : i32, i32, i32
  }
}

module attributes {stable_mosaic.version = 11 : i64} {
  func.func @_proj1_kernel(%arg0: i32, %arg1: memref<8x8x8xf32, #tpu.memory_space<vmem>>, %arg2: memref<32x8xf32, #tpu.memory_space<vmem>>, %arg3: memref<8x32xf32, #tpu.memory_space<vmem>>, %arg4: memref<8x32x32xf32, #tpu.memory_space<vmem>>) attributes {dimension_semantics = [#tpu.dimension_semantics<arbitrary>], iteration_bounds = array<i64: 1>, scalar_prefetch = 0 : i64, scratch_operands = 0 : i64, tpu.core_type = #tpu.core_type<tc>, window_params = [{pipeline_mode = #tpu.pipeline_mode<synchronous>, transform_indices = @transform_0, window_bounds = array<i64: 8, 8, 8>}, {pipeline_mode = #tpu.pipeline_mode<synchronous>, transform_indices = @transform_1, window_bounds = array<i64: 32, 8>}, {pipeline_mode = #tpu.pipeline_mode<synchronous>, transform_indices = @transform_2, window_bounds = array<i64: 8, 32>}, {pipeline_mode = #tpu.pipeline_mode<synchronous>, transform_indices = @transform_3, window_bounds = array<i64: 8, 32, 32>}]} {
    %c0 = arith.constant 0 : index
    %c0_0 = arith.constant 0 : index
    %0 = vector.load %arg2[%c0, %c0_0] : memref<32x8xf32, #tpu.memory_space<vmem>>, vector<32x8xf32>
    %c0_1 = arith.constant 0 : index
    %c0_2 = arith.constant 0 : index
    %c0_3 = arith.constant 0 : index
    %1 = vector.load %arg1[%c0_1, %c0_2, %c0_3] : memref<8x8x8xf32, #tpu.memory_space<vmem>>, vector<1x8x8xf32>
    %2 = vector.shape_cast %1 : vector<1x8x8xf32> to vector<8x8xf32>
    %cst = arith.constant dense<0.000000e+00> : vector<32x8xf32>
    %3 = tpu.matmul %0, %2, %cst {dimension_numbers = #tpu.dot_dimension_numbers<[1], [0], [0], [1], [0, 0, 1, 1], [], []>} : vector<32x8xf32>, vector<8x8xf32>, vector<32x8xf32> -> vector<32x8xf32>
    %c0_4 = arith.constant 0 : index
    %c0_5 = arith.constant 0 : index
    %4 = vector.load %arg3[%c0_4, %c0_5] : memref<8x32xf32, #tpu.memory_space<vmem>>, vector<8x32xf32>
    %cst_6 = arith.constant dense<0.000000e+00> : vector<32x32xf32>
    %5 = tpu.matmul %3, %4, %cst_6 {dimension_numbers = #tpu.dot_dimension_numbers<[1], [0], [0], [1], [0, 0, 1, 1], [], []>} : vector<32x8xf32>, vector<8x32xf32>, vector<32x32xf32> -> vector<32x32xf32>
    %c0_7 = arith.constant 0 : index
    %c0_8 = arith.constant 0 : index
    %c0_9 = arith.constant 0 : index
    %6 = vector.load %arg4[%c0_7, %c0_8, %c0_9] : memref<8x32x32xf32, #tpu.memory_space<vmem>>, vector<1x32x32xf32>
    %7 = vector.shape_cast %6 : vector<1x32x32xf32> to vector<32x32xf32>
    %8 = vector.shape_cast %5 : vector<32x32xf32> to vector<1x32x32xf32>
    tpu.vector_store %arg4[%c0_7, %c0_8, %c0_9], %8 {strides = array<i32>} : memref<8x32x32xf32, #tpu.memory_space<vmem>>, vector<1x32x32xf32>,
    %c0_10 = arith.constant 0 : index
    %c0_11 = arith.constant 0 : index
    %9 = vector.load %arg2[%c0_10, %c0_11] : memref<32x8xf32, #tpu.memory_space<vmem>>, vector<32x8xf32>
    %c1 = arith.constant 1 : index
    %c0_12 = arith.constant 0 : index
    %c0_13 = arith.constant 0 : index
    %10 = vector.load %arg1[%c1, %c0_12, %c0_13] : memref<8x8x8xf32, #tpu.memory_space<vmem>>, vector<1x8x8xf32>
    %11 = vector.shape_cast %10 : vector<1x8x8xf32> to vector<8x8xf32>
    %cst_14 = arith.constant dense<0.000000e+00> : vector<32x8xf32>
    %12 = tpu.matmul %9, %11, %cst_14 {dimension_numbers = #tpu.dot_dimension_numbers<[1], [0], [0], [1], [0, 0, 1, 1], [], []>} : vector<32x8xf32>, vector<8x8xf32>, vector<32x8xf32> -> vector<32x8xf32>
    %c0_15 = arith.constant 0 : index
    %c0_16 = arith.constant 0 : index
    %13 = vector.load %arg3[%c0_15, %c0_16] : memref<8x32xf32, #tpu.memory_space<vmem>>, vector<8x32xf32>
    %cst_17 = arith.constant dense<0.000000e+00> : vector<32x32xf32>
    %14 = tpu.matmul %12, %13, %cst_17 {dimension_numbers = #tpu.dot_dimension_numbers<[1], [0], [0], [1], [0, 0, 1, 1], [], []>} : vector<32x8xf32>, vector<8x32xf32>, vector<32x32xf32> -> vector<32x32xf32>
    %c1_18 = arith.constant 1 : index
    %c0_19 = arith.constant 0 : index
    %c0_20 = arith.constant 0 : index
    %15 = vector.load %arg4[%c1_18, %c0_19, %c0_20] : memref<8x32x32xf32, #tpu.memory_space<vmem>>, vector<1x32x32xf32>
    %16 = vector.shape_cast %15 : vector<1x32x32xf32> to vector<32x32xf32>
    %17 = vector.shape_cast %14 : vector<32x32xf32> to vector<1x32x32xf32>
    tpu.vector_store %arg4[%c1_18, %c0_19, %c0_20], %17 {strides = array<i32>} : memref<8x32x32xf32, #tpu.memory_space<vmem>>, vector<1x32x32xf32>,
    %c0_21 = arith.constant 0 : index
    %c0_22 = arith.constant 0 : index
    %18 = vector.load %arg2[%c0_21, %c0_22] : memref<32x8xf32, #tpu.memory_space<vmem>>, vector<32x8xf32>
    %c2 = arith.constant 2 : index
    %c0_23 = arith.constant 0 : index
    %c0_24 = arith.constant 0 : index
    %19 = vector.load %arg1[%c2, %c0_23, %c0_24] : memref<8x8x8xf32, #tpu.memory_space<vmem>>, vector<1x8x8xf32>
    %20 = vector.shape_cast %19 : vector<1x8x8xf32> to vector<8x8xf32>
    %cst_25 = arith.constant dense<0.000000e+00> : vector<32x8xf32>
    %21 = tpu.matmul %18, %20, %cst_25 {dimension_numbers = #tpu.dot_dimension_numbers<[1], [0], [0], [1], [0, 0, 1, 1], [], []>} : vector<32x8xf32>, vector<8x8xf32>, vector<32x8xf32> -> vector<32x8xf32>
    %c0_26 = arith.constant 0 : index
    %c0_27 = arith.constant 0 : index
    %22 = vector.load %arg3[%c0_26, %c0_27] : memref<8x32xf32, #tpu.memory_space<vmem>>, vector<8x32xf32>
    %cst_28 = arith.constant dense<0.000000e+00> : vector<32x32xf32>
    %23 = tpu.matmul %21, %22, %cst_28 {dimension_numbers = #tpu.dot_dimension_numbers<[1], [0], [0], [1], [0, 0, 1, 1], [], []>} : vector<32x8xf32>, vector<8x32xf32>, vector<32x32xf32> -> vector<32x32xf32>
    %c2_29 = arith.constant 2 : index
    %c0_30 = arith.constant 0 : index
    %c0_31 = arith.constant 0 : index
    %24 = vector.load %arg4[%c2_29, %c0_30, %c0_31] : memref<8x32x32xf32, #tpu.memory_space<vmem>>, vector<1x32x32xf32>
    %25 = vector.shape_cast %24 : vector<1x32x32xf32> to vector<32x32xf32>
    %26 = vector.shape_cast %23 : vector<32x32xf32> to vector<1x32x32xf32>
    tpu.vector_store %arg4[%c2_29, %c0_30, %c0_31], %26 {strides = array<i32>} : memref<8x32x32xf32, #tpu.memory_space<vmem>>, vector<1x32x32xf32>,
    %c0_32 = arith.constant 0 : index
    %c0_33 = arith.constant 0 : index
    %27 = vector.load %arg2[%c0_32, %c0_33] : memref<32x8xf32, #tpu.memory_space<vmem>>, vector<32x8xf32>
    %c3 = arith.constant 3 : index
    %c0_34 = arith.constant 0 : index
    %c0_35 = arith.constant 0 : index
    %28 = vector.load %arg1[%c3, %c0_34, %c0_35] : memref<8x8x8xf32, #tpu.memory_space<vmem>>, vector<1x8x8xf32>
    %29 = vector.shape_cast %28 : vector<1x8x8xf32> to vector<8x8xf32>
    %cst_36 = arith.constant dense<0.000000e+00> : vector<32x8xf32>
    %30 = tpu.matmul %27, %29, %cst_36 {dimension_numbers = #tpu.dot_dimension_numbers<[1], [0], [0], [1], [0, 0, 1, 1], [], []>} : vector<32x8xf32>, vector<8x8xf32>, vector<32x8xf32> -> vector<32x8xf32>
    %c0_37 = arith.constant 0 : index
    %c0_38 = arith.constant 0 : index
    %31 = vector.load %arg3[%c0_37, %c0_38] : memref<8x32xf32, #tpu.memory_space<vmem>>, vector<8x32xf32>
    %cst_39 = arith.constant dense<0.000000e+00> : vector<32x32xf32>
    %32 = tpu.matmul %30, %31, %cst_39 {dimension_numbers = #tpu.dot_dimension_numbers<[1], [0], [0], [1], [0, 0, 1, 1], [], []>} : vector<32x8xf32>, vector<8x32xf32>, vector<32x32xf32> -> vector<32x32xf32>
    %c3_40 = arith.constant 3 : index
    %c0_41 = arith.constant 0 : index
    %c0_42 = arith.constant 0 : index
    %33 = vector.load %arg4[%c3_40, %c0_41, %c0_42] : memref<8x32x32xf32, #tpu.memory_space<vmem>>, vector<1x32x32xf32>
    %34 = vector.shape_cast %33 : vector<1x32x32xf32> to vector<32x32xf32>
    %35 = vector.shape_cast %32 : vector<32x32xf32> to vector<1x32x32xf32>
    tpu.vector_store %arg4[%c3_40, %c0_41, %c0_42], %35 {strides = array<i32>} : memref<8x32x32xf32, #tpu.memory_space<vmem>>, vector<1x32x32xf32>,
    %c0_43 = arith.constant 0 : index
    %c0_44 = arith.constant 0 : index
    %36 = vector.load %arg2[%c0_43, %c0_44] : memref<32x8xf32, #tpu.memory_space<vmem>>, vector<32x8xf32>
    %c4 = arith.constant 4 : index
    %c0_45 = arith.constant 0 : index
    %c0_46 = arith.constant 0 : index
    %37 = vector.load %arg1[%c4, %c0_45, %c0_46] : memref<8x8x8xf32, #tpu.memory_space<vmem>>, vector<1x8x8xf32>
    %38 = vector.shape_cast %37 : vector<1x8x8xf32> to vector<8x8xf32>
    %cst_47 = arith.constant dense<0.000000e+00> : vector<32x8xf32>
    %39 = tpu.matmul %36, %38, %cst_47 {dimension_numbers = #tpu.dot_dimension_numbers<[1], [0], [0], [1], [0, 0, 1, 1], [], []>} : vector<32x8xf32>, vector<8x8xf32>, vector<32x8xf32> -> vector<32x8xf32>
    %c0_48 = arith.constant 0 : index
    %c0_49 = arith.constant 0 : index
    %40 = vector.load %arg3[%c0_48, %c0_49] : memref<8x32xf32, #tpu.memory_space<vmem>>, vector<8x32xf32>
    %cst_50 = arith.constant dense<0.000000e+00> : vector<32x32xf32>
    %41 = tpu.matmul %39, %40, %cst_50 {dimension_numbers = #tpu.dot_dimension_numbers<[1], [0], [0], [1], [0, 0, 1, 1], [], []>} : vector<32x8xf32>, vector<8x32xf32>, vector<32x32xf32> -> vector<32x32xf32>
    %c4_51 = arith.constant 4 : index
    %c0_52 = arith.constant 0 : index
    %c0_53 = arith.constant 0 : index
    %42 = vector.load %arg4[%c4_51, %c0_52, %c0_53] : memref<8x32x32xf32, #tpu.memory_space<vmem>>, vector<1x32x32xf32>
    %43 = vector.shape_cast %42 : vector<1x32x32xf32> to vector<32x32xf32>
    %44 = vector.shape_cast %41 : vector<32x32xf32> to vector<1x32x32xf32>
    tpu.vector_store %arg4[%c4_51, %c0_52, %c0_53], %44 {strides = array<i32>} : memref<8x32x32xf32, #tpu.memory_space<vmem>>, vector<1x32x32xf32>,
    %c0_54 = arith.constant 0 : index
    %c0_55 = arith.constant 0 : index
    %45 = vector.load %arg2[%c0_54, %c0_55] : memref<32x8xf32, #tpu.memory_space<vmem>>, vector<32x8xf32>
    %c5 = arith.constant 5 : index
    %c0_56 = arith.constant 0 : index
    %c0_57 = arith.constant 0 : index
    %46 = vector.load %arg1[%c5, %c0_56, %c0_57] : memref<8x8x8xf32, #tpu.memory_space<vmem>>, vector<1x8x8xf32>
    %47 = vector.shape_cast %46 : vector<1x8x8xf32> to vector<8x8xf32>
    %cst_58 = arith.constant dense<0.000000e+00> : vector<32x8xf32>
    %48 = tpu.matmul %45, %47, %cst_58 {dimension_numbers = #tpu.dot_dimension_numbers<[1], [0], [0], [1], [0, 0, 1, 1], [], []>} : vector<32x8xf32>, vector<8x8xf32>, vector<32x8xf32> -> vector<32x8xf32>
    %c0_59 = arith.constant 0 : index
    %c0_60 = arith.constant 0 : index
    %49 = vector.load %arg3[%c0_59, %c0_60] : memref<8x32xf32, #tpu.memory_space<vmem>>, vector<8x32xf32>
    %cst_61 = arith.constant dense<0.000000e+00> : vector<32x32xf32>
    %50 = tpu.matmul %48, %49, %cst_61 {dimension_numbers = #tpu.dot_dimension_numbers<[1], [0], [0], [1], [0, 0, 1, 1], [], []>} : vector<32x8xf32>, vector<8x32xf32>, vector<32x32xf32> -> vector<32x32xf32>
    %c5_62 = arith.constant 5 : index
    %c0_63 = arith.constant 0 : index
    %c0_64 = arith.constant 0 : index
    %51 = vector.load %arg4[%c5_62, %c0_63, %c0_64] : memref<8x32x32xf32, #tpu.memory_space<vmem>>, vector<1x32x32xf32>
    %52 = vector.shape_cast %51 : vector<1x32x32xf32> to vector<32x32xf32>
    %53 = vector.shape_cast %50 : vector<32x32xf32> to vector<1x32x32xf32>
    tpu.vector_store %arg4[%c5_62, %c0_63, %c0_64], %53 {strides = array<i32>} : memref<8x32x32xf32, #tpu.memory_space<vmem>>, vector<1x32x32xf32>,
    %c0_65 = arith.constant 0 : index
    %c0_66 = arith.constant 0 : index
    %54 = vector.load %arg2[%c0_65, %c0_66] : memref<32x8xf32, #tpu.memory_space<vmem>>, vector<32x8xf32>
    %c6 = arith.constant 6 : index
    %c0_67 = arith.constant 0 : index
    %c0_68 = arith.constant 0 : index
    %55 = vector.load %arg1[%c6, %c0_67, %c0_68] : memref<8x8x8xf32, #tpu.memory_space<vmem>>, vector<1x8x8xf32>
    %56 = vector.shape_cast %55 : vector<1x8x8xf32> to vector<8x8xf32>
    %cst_69 = arith.constant dense<0.000000e+00> : vector<32x8xf32>
    %57 = tpu.matmul %54, %56, %cst_69 {dimension_numbers = #tpu.dot_dimension_numbers<[1], [0], [0], [1], [0, 0, 1, 1], [], []>} : vector<32x8xf32>, vector<8x8xf32>, vector<32x8xf32> -> vector<32x8xf32>
    %c0_70 = arith.constant 0 : index
    %c0_71 = arith.constant 0 : index
    %58 = vector.load %arg3[%c0_70, %c0_71] : memref<8x32xf32, #tpu.memory_space<vmem>>, vector<8x32xf32>
    %cst_72 = arith.constant dense<0.000000e+00> : vector<32x32xf32>
    %59 = tpu.matmul %57, %58, %cst_72 {dimension_numbers = #tpu.dot_dimension_numbers<[1], [0], [0], [1], [0, 0, 1, 1], [], []>} : vector<32x8xf32>, vector<8x32xf32>, vector<32x32xf32> -> vector<32x32xf32>
    %c6_73 = arith.constant 6 : index
    %c0_74 = arith.constant 0 : index
    %c0_75 = arith.constant 0 : index
    %60 = vector.load %arg4[%c6_73, %c0_74, %c0_75] : memref<8x32x32xf32, #tpu.memory_space<vmem>>, vector<1x32x32xf32>
    %61 = vector.shape_cast %60 : vector<1x32x32xf32> to vector<32x32xf32>
    %62 = vector.shape_cast %59 : vector<32x32xf32> to vector<1x32x32xf32>
    tpu.vector_store %arg4[%c6_73, %c0_74, %c0_75], %62 {strides = array<i32>} : memref<8x32x32xf32, #tpu.memory_space<vmem>>, vector<1x32x32xf32>,
    %c0_76 = arith.constant 0 : index
    %c0_77 = arith.constant 0 : index
    %63 = vector.load %arg2[%c0_76, %c0_77] : memref<32x8xf32, #tpu.memory_space<vmem>>, vector<32x8xf32>
    %c7 = arith.constant 7 : index
    %c0_78 = arith.constant 0 : index
    %c0_79 = arith.constant 0 : index
    %64 = vector.load %arg1[%c7, %c0_78, %c0_79] : memref<8x8x8xf32, #tpu.memory_space<vmem>>, vector<1x8x8xf32>
    %65 = vector.shape_cast %64 : vector<1x8x8xf32> to vector<8x8xf32>
    %cst_80 = arith.constant dense<0.000000e+00> : vector<32x8xf32>
    %66 = tpu.matmul %63, %65, %cst_80 {dimension_numbers = #tpu.dot_dimension_numbers<[1], [0], [0], [1], [0, 0, 1, 1], [], []>} : vector<32x8xf32>, vector<8x8xf32>, vector<32x8xf32> -> vector<32x8xf32>
    %c0_81 = arith.constant 0 : index
    %c0_82 = arith.constant 0 : index
    %67 = vector.load %arg3[%c0_81, %c0_82] : memref<8x32xf32, #tpu.memory_space<vmem>>, vector<8x32xf32>
    %cst_83 = arith.constant dense<0.000000e+00> : vector<32x32xf32>
    %68 = tpu.matmul %66, %67, %cst_83 {dimension_numbers = #tpu.dot_dimension_numbers<[1], [0], [0], [1], [0, 0, 1, 1], [], []>} : vector<32x8xf32>, vector<8x32xf32>, vector<32x32xf32> -> vector<32x32xf32>
    %c7_84 = arith.constant 7 : index
    %c0_85 = arith.constant 0 : index
    %c0_86 = arith.constant 0 : index
    %69 = vector.load %arg4[%c7_84, %c0_85, %c0_86] : memref<8x32x32xf32, #tpu.memory_space<vmem>>, vector<1x32x32xf32>
    %70 = vector.shape_cast %69 : vector<1x32x32xf32> to vector<32x32xf32>
    %71 = vector.shape_cast %68 : vector<32x32xf32> to vector<1x32x32xf32>
    tpu.vector_store %arg4[%c7_84, %c0_85, %c0_86], %71 {strides = array<i32>} : memref<8x32x32xf32, #tpu.memory_space<vmem>>, vector<1x32x32xf32>,
    return
  }
  func.func @transform_0(%arg0: i32) -> (i32, i32, i32) {
    %c0_i32 = arith.constant 0 : i32
    %c0_i32_0 = arith.constant 0 : i32
    %c0_i32_1 = arith.constant 0 : i32
    %c0_i32_2 = arith.constant 0 : i32
    return %c0_i32, %c0_i32_0, %c0_i32_1 : i32, i32, i32
  }
  func.func @transform_1(%arg0: i32) -> (i32, i32) {
    %c0_i32 = arith.constant 0 : i32
    %c0_i32_0 = arith.constant 0 : i32
    %c0_i32_1 = arith.constant 0 : i32
    return %c0_i32, %c0_i32_0 : i32, i32
  }
  func.func @transform_2(%arg0: i32) -> (i32, i32) {
    %c0_i32 = arith.constant 0 : i32
    %c0_i32_0 = arith.constant 0 : i32
    %c0_i32_1 = arith.constant 0 : i32
    return %c0_i32, %c0_i32_0 : i32, i32
  }
  func.func @transform_3(%arg0: i32) -> (i32, i32, i32) {
    %c0_i32 = arith.constant 0 : i32
    %c0_i32_0 = arith.constant 0 : i32
    %c0_i32_1 = arith.constant 0 : i32
    %c0_i32_2 = arith.constant 0 : i32
    return %c0_i32, %c0_i32_0, %c0_i32_1 : i32, i32, i32
  }
}

</mosaic_0001>

<bundles_post_ra>
// kernel: pose_estimation_ae_group_forward.6
= control target key start
LH: loop header
LB: loop body
LE: loop exit
PB: predicated region body
PF: predicated region fallthrough
CT: control target
= control target key end

     0   :  { %vm70_vm0 = vcmask 1044480   ;;  %vm71_vm1 = vcmask 1045504   ;;  %v223_v1 = vmov 65535   ;;  %v224_v3 = vmov 0   ;;  %s281_s1 = inlined_call_operand.vmem [shape: bf16[27,512], index: 1, kind: input, shape index: {}]   ;;  %s282_s2 = inlined_call_operand.vmem [shape: f32[8,1], index: 2, kind: input, shape index: {}]   ;;  %s283_s0 = inlined_call_operand.vmem [shape: bf16[8,27], index: 0, kind: input, shape index: {}]   ;;  %s284_s3 = inlined_call_operand.vmem [shape: bf16[8,512], index: 3, kind: output, shape index: {}]  }
   0x1   :  { %v211_v0 = vld [vmem:[%s281_s1 + $0x4] ss:$16 sps:$4 sm:$0xff]   ;;  %v72_v2 = vsel %vm70_vm0, 4294967295, %v223_v1  ;;  %118 = vmatprep.mubr.bf16.mxu0 %v224_v3  ;;  %159 = vmatprep.mubr.bf16.mxu1 %v224_v3  ;;  %v213_v4 = vld [vmem:[%s281_s1 + $0xc] ss:$16 sps:$4 sm:$0xff]   ;;  %vm66_vm2 = vcmask 220160  }
   0x2   :  { %210 = vset.pattern.permute.xlu0 %v224_v3  ;;  %86 = vmatprep.subr.bf16.mxu0 %v211_v0  ;;  %v215_v5 = vld [vmem:[%s281_s1] ss:$16 sps:$4 sm:$0xff]   ;;  %v216_v6 = vld [vmem:[%s281_s1 + $0x8] ss:$16 sps:$4 sm:$0xff]   ;;  %v73_v7 = vsel %vm71_vm1, %v72_v2, 0 }
   0x3   :  { %127 = vmatprep.subr.bf16.mxu1 %v213_v4  ;;  %v217_v8 = vld [vmem:[%s281_s1 + $0x24] ss:$16 sps:$4 sm:$0x3f]   ;;  %87 = vmatpush1.bf16.msra.mxu0 %v215_v5  ;;  %v219_v9 = vld [vmem:[%s281_s1 + $0x2c] ss:$16 sps:$4 sm:$0x3f]  }
   0x4   :  { %128 = vmatpush1.bf16.msra.mxu1 %v216_v6  ;;  %v24_v10 = vld [vmem:[%s282_s2] sm:$0xff]  ;;  %v78_v11 = vand.u32 %v217_v8, %v73_v7  ;;  %v222_v13 = vld [vmem:[%s281_s1 + $0x28] ss:$16 sps:$4 sm:$0x3f]   ;;  %v84_v14 = vand.u32 %v219_v9, %v73_v7 }
   0x5   :  { %v221_v12 = vld [vmem:[%s281_s1 + $0x20] ss:$16 sps:$4 sm:$0x3f]   ;;  %27 = vperm.xlu0 %210, %v24_v10   ;;  %v81_v16 = vand.u32 %v222_v13, %v73_v7 }
   0x6   :  { %88 = vmatprep.subr.bf16.mxu0 %v78_v11  ;;  %v75_v15 = vand.u32 %v221_v12, %v73_v7  ;;  %129 = vmatprep.subr.bf16.mxu1 %v84_v14  ;;  %v15_v17 = vld [vmem:[%s283_s0] sm:$0xf] }
   0x8   :  { %89 = vmatpush1.bf16.msra.mxu0 %v75_v15  ;;  %130 = vmatpush1.bf16.msra.mxu1 %v81_v16 }
   0xb   :  { %202 = vmatmul.mubr.msk.bf16.vlgmr.msra.gmra.mrb[0].mxu0 %vm66_vm2, %v15_v17  ;;  %203 = vmatmul.mubr.msk.bf16.vlgmr.msra.gmra.mrb[0].mxu1 %vm66_vm2, %v15_v17 }
  0x84   :  { %v28_v18 = vpop.permute.xlu0 %27 }
  0xde   :  { %v120_v19 = vpop.f32.mrb[0].mxu0  ;;  %v161_v20 = vpop.f32.mrb[0].mxu1 }
  0xdf   :  { %v121_v21 = vadd.f32 %v120_v19, %v28_v18  ;;  %v162_v22 = vadd.f32 %v161_v20, %v28_v18  ;;  %v122_v23 = vpop.f32.mrb[1].mxu0  ;;  %v163_v24 = vpop.f32.mrb[1].mxu1 }
  0xe0   :  { %v123_v25 = vadd.f32 %v122_v23, %v28_v18  ;;  %v164_v26 = vadd.f32 %v163_v24, %v28_v18  ;;  %v124_v27 = vpop.f32.mrb[2].mxu0  ;;  %v165_v28 = vpop.f32.mrb[2].mxu1 }
  0xe1   :  { %v168_v29 = vmax.f32 %v121_v21, 0.0  ;;  %v170_v30 = vmax.f32 %v162_v22, 0.0  ;;  %v125_v31 = vpop.f32.mrb[3].mxu0  ;;  %v166_v32 = vpop.f32.mrb[3].mxu1 }
  0xe2   :  { %v169_v33 = vmax.f32 %v123_v25, 0.0  ;;  %v171_v34 = vmax.f32 %v164_v26, 0.0 }
  0xe4   :  { %v206_v35 = vpack.c.bf16 %v169_v33, %v168_v29  ;;  %v207_v36 = vpack.c.bf16 %v171_v34, %v170_v30 }
  0xe6   :  { %188 = vst [vmem:[%s284_s3] sm:$0xff] %v206_v35  ;;  %189 = vst [vmem:[%s284_s3 + $0x8] sm:$0xff] %v207_v36 }

// kernel: pose_estimation_ae_group_forward.7
= control target key start
LH: loop header
LB: loop body
LE: loop exit
PB: predicated region body
PF: predicated region fallthrough
CT: control target
= control target key end

     0   :  { %v148_v0 = vmov 0.0   ;;  %vm149_vm0 = vmmov 0   ;;  %v150_v2 = vmov 0   ;;  %vm62_vm1 = vcmask 1043456   ;;  %s195_s1 = inlined_call_operand.vmem [shape: bf16[72,128], index: 1, kind: input, shape index: {}]   ;;  %s196_s2 = inlined_call_operand.vmem [shape: f32[8,1], index: 2, kind: input, shape index: {}]   ;;  %s197_s0 = inlined_call_operand.vmem [shape: bf16[8,72], index: 0, kind: input, shape index: {}]   ;;  %s198_s3 = inlined_call_operand.vmem [shape: bf16[8,128], index: 3, kind: output, shape index: {}]  }
   0x1   :  { %125 = vmatprep.subr.bf16.mxu0 %v148_v0  ;;  %v143_v1 = vld [vmem:[%s195_s1] sm:$0xff]   ;;  %135 = vmatprep.mubr.msk.bf16.mxu0 %vm149_vm0, %v148_v0  ;;  %v144_v3 = vld [vmem:[%s195_s1 + $0x8] sm:$0xff]   ;;  %v145_v5 = vld [vmem:[%s195_s1 + $0x10] sm:$0xff]   ;;  %vm58_vm2 = vcmask 588800  }
   0x2   :  { %142 = vset.pattern.permute.xlu0 %v150_v2  ;;  %126 = vmatpush3.bf16.msra.mxu0 %v143_v1  ;;  %v25_v4 = vld [vmem:[%s196_s2] sm:$0xff]  ;;  %v146_v6 = vld [vmem:[%s195_s1 + $0x18] sm:$0xff]  }
   0x3   :  { %127 = vmatprep.subr.bf16.mxu0 %v148_v0  ;;  %28 = vperm.xlu0 %142, %v25_v4   ;;  %v147_v7 = vld [vmem:[%s195_s1 + $0x20] ss:$0 sps:$4 sm:$0xff]  }
   0x4   :  { %v64_v8 = vsel %vm62_vm1, %v147_v7, 0  ;;  %v15_v9 = vld [vmem:[%s197_s0] sm:$0xf] }
   0x6   :  { %128 = vmatpush3.bf16.msra.mxu0 %v144_v3 }
   0x7   :  { %129 = vmatprep.subr.bf16.mxu0 %v148_v0 }
   0xa   :  { %130 = vmatpush3.bf16.msra.mxu0 %v145_v5 }
   0xb   :  { %131 = vmatprep.subr.bf16.mxu0 %v148_v0 }
   0xe   :  { %132 = vmatpush3.bf16.msra.mxu0 %v146_v6 }
   0xf   :  { %133 = vmatprep.subr.bf16.mxu0 %v148_v0 }
  0x12   :  { %134 = vmatpush3.bf16.msra.mxu0 %v64_v8 }
  0x15   :  { %136 = vmatmul.mubr.msk.bf16.vlgmr.msra.gmra.mrb[0].mxu0 %vm58_vm2, %v15_v9 }
  0x82   :  { %v29_v10 = vpop.permute.xlu0 %28 }
  0xe8   :  { %v100_v11 = vpop.f32.mrb[0].mxu0 }
  0xe9   :  { %v101_v12 = vadd.f32 %v100_v11, %v29_v10  ;;  %v137_v13 = vpop.f32.mrb[1].mxu0 }
  0xea   :  { %v103_v14 = vpop.f32.mrb[2].mxu0 }
  0xeb   :  { %v106_v15 = vmax.f32 %v101_v12, 0.0  ;;  %v138_v16 = vpop.f32.mrb[3].mxu0 }
  0xed   :  { %v107_v17 = vpack.c.bf16 %v106_v15, %v106_v15 }
  0xef   :  { %108 = vst [vmem:[%s198_s3] sm:$0xf] %v107_v17 }

// kernel: pose_estimation_ae_group_forward.9
= control target key start
LH: loop header
LB: loop body
LE: loop exit
PB: predicated region body
PF: predicated region fallthrough
CT: control target
= control target key end

     0   :  { %vm38_vm0 = vcmask 1043456   ;;  %v161_v2 = vmov 0   ;;  %vm34_vm1 = vcmask 64512   ;;  %s204_s1 = inlined_call_operand.vmem [shape: bf16[8,512], index: 1, kind: input, shape index: {}]   ;;  %s205_s2 = inlined_call_operand.vmem [shape: f32[4,1], index: 2, kind: input, shape index: {}]   ;;  %s206_s0 = inlined_call_operand.vmem [shape: bf16[4,8], index: 0, kind: input, shape index: {}]   ;;  %s207_s3 = inlined_call_operand.vmem [shape: f32[4,512], index: 3, kind: output, shape index: {}]  }
   0x1   :  { %v16_v0 = vld [vmem:[%s204_s1] sm:$0xff]  ;;  %v17_v1 = vld [vmem:[%s204_s1 + $0x8] sm:$0xff]  ;;  %83 = vmatprep.mubr.bf16.mxu0 %v161_v2  ;;  %124 = vmatprep.mubr.bf16.mxu1 %v161_v2 }
   0x2   :  { %v148_v3 = vcombine.high %v16_v0, %v16_v0  ;;  %v150_v4 = vcombine.high %v17_v1, %v17_v1  ;;  %v147_v5 = vcombine.low %v16_v0, %v16_v0  ;;  %v149_v6 = vcombine.low %v17_v1, %v17_v1  ;;  %156 = vset.pattern.permute.xlu0 %v161_v2  ;;  %v18_v7 = vld [vmem:[%s205_s2] sm:$0xf] }
   0x3   :  { %21 = vperm.xlu0 %156, %v18_v7   ;;  %v15_v10 = vld [vmem:[%s206_s0] sm:$0x3] }
   0x4   :  { %151 = vmatprep.subr.msk.bf16.mxu0 %vm38_vm0, %v148_v3  ;;  %153 = vmatprep.subr.msk.bf16.mxu1 %vm38_vm0, %v150_v4  ;;  %v40_v8 = vsel %vm38_vm0, %v147_v5, 0  ;;  %v46_v9 = vsel %vm38_vm0, %v149_v6, 0 }
   0x5   :  { %52 = vmatpush1.bf16.msra.mxu0 %v40_v8  ;;  %93 = vmatpush1.bf16.msra.mxu1 %v46_v9 }
   0x8   :  { %152 = vmatmul.mubr.msk.bf16.vlgmr.msra.gmra.mrb[0].mxu0 %vm34_vm1, %v15_v10  ;;  %154 = vmatmul.mubr.msk.bf16.vlgmr.msra.gmra.mrb[0].mxu1 %vm34_vm1, %v15_v10 }
  0x82   :  { %v22_v11 = vpop.permute.xlu0 %21 }
  0xdb   :  { %v85_v12 = vpop.f32.mrb[0].mxu0  ;;  %v126_v13 = vpop.f32.mrb[0].mxu1 }
  0xdc   :  { %v86_v14 = vadd.f32 %v85_v12, %v22_v11  ;;  %v127_v15 = vadd.f32 %v126_v13, %v22_v11  ;;  %v87_v16 = vpop.f32.mrb[1].mxu0  ;;  %v128_v17 = vpop.f32.mrb[1].mxu1 }
  0xdd   :  { %v88_v18 = vadd.f32 %v87_v16, %v22_v11  ;;  %v129_v19 = vadd.f32 %v128_v17, %v22_v11  ;;  %v89_v20 = vpop.f32.mrb[2].mxu0  ;;  %v130_v21 = vpop.f32.mrb[2].mxu1 }
  0xde   :  { %v90_v22 = vpop.f32.mrb[3].mxu0  ;;  %v131_v23 = vpop.f32.mrb[3].mxu1 }
  0xdf   :  { %v137_v24 = vcombine.low %v86_v14, %v88_v18  ;;  %v138_v25 = vcombine.low %v127_v15, %v129_v19 }
  0xe1   :  { %141 = vst [vmem:[%s207_s3] sm:$0xff] %v137_v24  ;;  %142 = vst [vmem:[%s207_s3 + $0x8] sm:$0xff] %v138_v25 }

// kernel: pose_estimation_ae_group_forward.8
= control target key start
LH: loop header
LB: loop body
LE: loop exit
PB: predicated region body
PF: predicated region fallthrough
CT: control target
= control target key end

     0   :  { %vm27_vm0 = vcmask 1043456   ;;  %v89_v0 = vmov 0.0   ;;  %vm90_vm1 = vmmov 0   ;;  %v91_v4 = vmov 0   ;;  %s124_s1 = inlined_call_operand.vmem [shape: bf16[8,128], index: 1, kind: input, shape index: {}]   ;;  %s125_s0 = inlined_call_operand.vmem [shape: bf16[8,8], index: 0, kind: input, shape index: {}]   ;;  %s126_s2 = inlined_call_operand.vmem [shape: f32[8,1], index: 2, kind: input, shape index: {}]   ;;  %s127_s3 = inlined_call_operand.vmem [shape: f32[8,128], index: 3, kind: output, shape index: {}]  }
   0x1   :  { %79 = vmatprep.subr.bf16.mxu0 %v89_v0  ;;  %v16_v1 = vld [vmem:[%s124_s1] sm:$0xf]  ;;  %81 = vmatprep.mubr.msk.bf16.mxu0 %vm90_vm1, %v89_v0  ;;  %vm23_vm2 = vcmask 64512  }
   0x2   :  { %v17_v2 = vld [vmem:[%s126_s2] sm:$0xff]  ;;  %v29_v3 = vsel %vm27_vm0, %v16_v1, 0  ;;  %88 = vset.pattern.permute.xlu0 %v91_v4 }
   0x3   :  { %80 = vmatpush3.bf16.msra.mxu0 %v29_v3  ;;  %v15_v5 = vld [vmem:[%s125_s0] sm:$0xf]  ;;  %20 = vperm.xlu0 %88, %v17_v2  }
   0x6   :  { %82 = vmatmul.mubr.msk.bf16.vlgmr.msra.gmra.mrb[0].mxu0 %vm23_vm2, %v15_v5 }
  0x82   :  { %v21_v6 = vpop.permute.xlu0 %20 }
  0xd9   :  { %v65_v7 = vpop.f32.mrb[0].mxu0 }
  0xda   :  { %v66_v8 = vadd.f32 %v65_v7, %v21_v6  ;;  %v83_v9 = vpop.f32.mrb[1].mxu0 }
  0xdb   :  { %v68_v10 = vpop.f32.mrb[2].mxu0 }
  0xdc   :  { %71 = vst [vmem:[%s127_s3] sm:$0xff] %v66_v8  ;;  %v84_v11 = vpop.f32.mrb[3].mxu0 }

// kernel: pose_estimation_ae_group_forward.10
= control target key start
LH: loop header
LB: loop body
LE: loop exit
PB: predicated region body
PF: predicated region fallthrough
CT: control target
= control target key end

     0   :  { %vm28_vm0 = vcmask 64512   ;;  %vm133_vm1 = vcmask 130048   ;;  %vm427_vm2 = vcmask 261120   ;;  %s4548_s0 = inlined_call_operand.vmem [shape: f32[8,8,8], index: 0, kind: input, shape index: {}]   ;;  %s4549_s2 = inlined_call_operand.vmem [shape: f32[32,8], index: 2, kind: input, shape index: {}]   ;;  %s4550_s1 = inlined_call_operand.vmem [shape: f32[8,16,16], index: 1, kind: input, shape index: {}]   ;;  %s4551_s4 = inlined_call_operand.vmem [shape: f32[32,16], index: 4, kind: input, shape index: {}]   ;;  %s4552_s5 = inlined_call_operand.vmem [shape: f32[16,32], index: 5, kind: input, shape index: {}]   ;;  %s4553_s3 = inlined_call_operand.vmem [shape: f32[8,32], index: 3, kind: input, shape index: {}]   ;;  %s4554_s6 = inlined_call_operand.vmem [shape: f32[8,32,32], index: 6, kind: output, shape index: {}]  }
   0x1   :  { %v27_v0 = vld [vmem:[%s4548_s0] sm:$0xff]  ;;  %v4082_v2 = vld [vmem:[%s4549_s2 + $0x8] sm:$0xff]  ;;  %v4095_v5 = vld [vmem:[%s4549_s2 + $0x10] sm:$0xff] }
   0x2   :  { %v4077_v1 = vld [vmem:[%s4549_s2] sm:$0xff]  ;;  %3652 = vmatprep.subr.mxu1 %v27_v0  ;;  %v132_v4 = vld [vmem:[%s4550_s1 + $0x8] sm:$0xff]  ;;  %v4107_v8 = vld [vmem:[%s4549_s2 + $0x18] sm:$0xff] }
   0x3   :  { %3654 = vmatprep.mubr.msk.f32.mxu1 %vm28_vm0, %v4077_v1  ;;  %v131_v3 = vld [vmem:[%s4550_s1] sm:$0xff]  ;;  %3653 = vmatpush3.msra.mxu1 %v27_v0  ;;  %v3315_v7 = vld [vmem:[%s4548_s0 + $0x8] sm:$0xff]  ;;  %v3320_v10 = vld [vmem:[%s4550_s1 + $0x10] sm:$0xff] }
   0x4   :  { %v3940_v6 = vpack.c.bf16 %v132_v4, %v131_v3  ;;  %3655 = vmatmul.mubr.msk.f32.vlgmr.msra.gmra.mrb[0].mxu1 %vm28_vm0, %v4082_v2  ;;  %v4112_v9 = vld [vmem:[%s4551_s4] sm:$0xff]  ;;  %v3321_v11 = vld [vmem:[%s4550_s1 + $0x18] sm:$0xff]  ;;  %v4127_v12 = vld [vmem:[%s4551_s4 + $0x8] sm:$0xff] }
   0x5   :  { %3657 = vmatprep.mubr.msk.f32.mxu1 %vm28_vm0, %v4095_v5  ;;  %v4132_v13 = vld [vmem:[%s4551_s4 + $0x10] sm:$0xff]  ;;  %v3948_v14 = vpack.c.bf16 %v3321_v11, %v3320_v10  ;;  %v4141_v15 = vld [vmem:[%s4551_s4 + $0x18] sm:$0xff]  ;;  %v3343_v17 = vld [vmem:[%s4550_s1 + $0x20] sm:$0xff] }
   0x6   :  { %3941 = vmatprep.subr.bf16.mxu1 %v3940_v6  ;;  %v3338_v16 = vld [vmem:[%s4548_s0 + $0x10] sm:$0xff]  ;;  %v3344_v18 = vld [vmem:[%s4550_s1 + $0x28] sm:$0xff]  ;;  %v3361_v20 = vld [vmem:[%s4548_s0 + $0x18] sm:$0xff] }
   0x7   :  { %3943 = vmatpush3.bf16.msra.mxu1 %v3940_v6  ;;  %v3956_v19 = vpack.c.bf16 %v3344_v18, %v3343_v17  ;;  %v3366_v21 = vld [vmem:[%s4550_s1 + $0x30] sm:$0xff]  ;;  %v3367_v22 = vld [vmem:[%s4550_s1 + $0x38] sm:$0xff]  ;;  %v3384_v24 = vld [vmem:[%s4548_s0 + $0x20] sm:$0xff] }
   0x8   :  { %3688 = vmatprep.subr.mxu1 %v3315_v7  ;;  %3658 = vmatmul.mubr.msk.f32.gmra.mrb[2].mxu1 %vm28_vm0, %v4107_v8  ;;  %v3964_v23 = vpack.c.bf16 %v3367_v22, %v3366_v21  ;;  %v3389_v25 = vld [vmem:[%s4550_s1 + $0x40] sm:$0xff]  ;;  %v3390_v26 = vld [vmem:[%s4550_s1 + $0x48] sm:$0xff]  ;;  %v3412_v29 = vld [vmem:[%s4550_s1 + $0x50] sm:$0xff] }
   0x9   :  { %3664 = vmatprep.mubr.msk.f32.mxu1 %vm133_vm1, %v4112_v9  ;;  %v3972_v27 = vpack.c.bf16 %v3390_v26, %v3389_v25  ;;  %v3407_v28 = vld [vmem:[%s4548_s0 + $0x28] sm:$0xff]  ;;  %v3413_v30 = vld [vmem:[%s4550_s1 + $0x58] sm:$0xff]  ;;  %v3430_v32 = vld [vmem:[%s4548_s0 + $0x30] sm:$0xff] }
   0xa   :  { %v3980_v31 = vpack.c.bf16 %v3413_v30, %v3412_v29  ;;  %v3435_v33 = vld [vmem:[%s4550_s1 + $0x60] sm:$0xff]  ;;  %v3436_v34 = vld [vmem:[%s4550_s1 + $0x68] sm:$0xff]  ;;  %v3453_v39 = vld [vmem:[%s4548_s0 + $0x38] sm:$0xff] }
   0xb   :  { %v3988_v35 = vpack.c.bf16 %v3436_v34, %v3435_v33  ;;  %v231_v36 = vld [vmem:[%s4552_s5] sm:$0xff]  ;;  %v232_v37 = vld [vmem:[%s4552_s5 + $0x8] sm:$0xff]  ;;  %v3458_v41 = vld [vmem:[%s4550_s1 + $0x70] sm:$0xff] }
   0xc   :  { %3665 = vmatmul.mubr.msk.f32.vlgmr.msra.gmra.mrb[4].mxu1 %vm133_vm1, %v4127_v12  ;;  %v4272_v38 = vpack.c.bf16 %v232_v37, %v231_v36  ;;  %v4288_v40 = vld [vmem:[%s4553_s3] sm:$0xff]  ;;  %v3459_v42 = vld [vmem:[%s4550_s1 + $0x78] sm:$0xff] }
   0xd   :  { %3689 = vmatpush3.msra.mxu1 %v3315_v7  ;;  %3667 = vmatprep.mubr.msk.f32.mxu1 %vm133_vm1, %v4132_v13  ;;  %v3996_v43 = vpack.c.bf16 %v3459_v42, %v3458_v41 }
   0xe   :  { %3949 = vmatprep.subr.bf16.mxu1 %v3948_v14  ;;  %3945 = vmatprep.subr.bf16.mxu0 %v4272_v38 }
   0xf   :  { %3947 = vmatpush3.bf16.msra.mxu0 %v4272_v38 }
  0x10   :  { %3668 = vmatmul.mubr.msk.f32.gmra.mrb[6].mxu1 %vm133_vm1, %v4141_v15  ;;  %3680 = vmatprep.subr.mxu0 %v4288_v40 }
  0x11   :  { %3690 = vmatprep.mubr.msk.f32.mxu1 %vm28_vm0, %v4077_v1 }
  0x14   :  { %3691 = vmatmul.mubr.msk.f32.vlgmr.msra.gmra.mrb[8].mxu1 %vm28_vm0, %v4082_v2 }
  0x15   :  { %3951 = vmatpush3.bf16.msra.mxu1 %v3948_v14  ;;  %3693 = vmatprep.mubr.msk.f32.mxu1 %vm28_vm0, %v4095_v5 }
  0x16   :  { %3724 = vmatprep.subr.mxu1 %v3338_v16 }
  0x18   :  { %3694 = vmatmul.mubr.msk.f32.gmra.mrb[10].mxu1 %vm28_vm0, %v4107_v8 }
  0x19   :  { %3700 = vmatprep.mubr.msk.f32.mxu1 %vm133_vm1, %v4112_v9 }
  0x1c   :  { %3701 = vmatmul.mubr.msk.f32.vlgmr.msra.gmra.mrb[12].mxu1 %vm133_vm1, %v4127_v12 }
  0x1d   :  { %3725 = vmatpush3.msra.mxu1 %v3338_v16  ;;  %3703 = vmatprep.mubr.msk.f32.mxu1 %vm133_vm1, %v4132_v13 }
  0x1e   :  { %3957 = vmatprep.subr.bf16.mxu1 %v3956_v19 }
  0x20   :  { %3704 = vmatmul.mubr.msk.f32.gmra.mrb[14].mxu1 %vm133_vm1, %v4141_v15 }
  0x21   :  { %3726 = vmatprep.mubr.msk.f32.mxu1 %vm28_vm0, %v4077_v1 }
  0x24   :  { %3727 = vmatmul.mubr.msk.f32.vlgmr.msra.gmra.mrb[16].mxu1 %vm28_vm0, %v4082_v2 }
  0x25   :  { %3959 = vmatpush3.bf16.msra.mxu1 %v3956_v19  ;;  %3729 = vmatprep.mubr.msk.f32.mxu1 %vm28_vm0, %v4095_v5 }
  0x26   :  { %3760 = vmatprep.subr.mxu1 %v3361_v20 }
  0x28   :  { %3730 = vmatmul.mubr.msk.f32.gmra.mrb[18].mxu1 %vm28_vm0, %v4107_v8 }
  0x29   :  { %3736 = vmatprep.mubr.msk.f32.mxu1 %vm133_vm1, %v4112_v9 }
  0x2c   :  { %3737 = vmatmul.mubr.msk.f32.vlgmr.msra.gmra.mrb[20].mxu1 %vm133_vm1, %v4127_v12 }
  0x2d   :  { %3761 = vmatpush3.msra.mxu1 %v3361_v20  ;;  %3739 = vmatprep.mubr.msk.f32.mxu1 %vm133_vm1, %v4132_v13 }
  0x2e   :  { %3965 = vmatprep.subr.bf16.mxu1 %v3964_v23 }
  0x30   :  { %3740 = vmatmul.mubr.msk.f32.gmra.mrb[22].mxu1 %vm133_vm1, %v4141_v15 }
  0x31   :  { %3762 = vmatprep.mubr.msk.f32.mxu1 %vm28_vm0, %v4077_v1 }
  0x34   :  { %3763 = vmatmul.mubr.msk.f32.vlgmr.msra.gmra.mrb[24].mxu1 %vm28_vm0, %v4082_v2 }
  0x35   :  { %3967 = vmatpush3.bf16.msra.mxu1 %v3964_v23  ;;  %3765 = vmatprep.mubr.msk.f32.mxu1 %vm28_vm0, %v4095_v5 }
  0x36   :  { %3796 = vmatprep.subr.mxu1 %v3384_v24 }
  0x38   :  { %3766 = vmatmul.mubr.msk.f32.gmra.mrb[26].mxu1 %vm28_vm0, %v4107_v8 }
  0x39   :  { %3772 = vmatprep.mubr.msk.f32.mxu1 %vm133_vm1, %v4112_v9 }
  0x3c   :  { %3773 = vmatmul.mubr.msk.f32.vlgmr.msra.gmra.mrb[28].mxu1 %vm133_vm1, %v4127_v12 }
  0x3d   :  { %3797 = vmatpush3.msra.mxu1 %v3384_v24  ;;  %3775 = vmatprep.mubr.msk.f32.mxu1 %vm133_vm1, %v4132_v13 }
  0x3e   :  { %3973 = vmatprep.subr.bf16.mxu1 %v3972_v27 }
  0x40   :  { %3776 = vmatmul.mubr.msk.f32.gmra.mrb[30].mxu1 %vm133_vm1, %v4141_v15 }
  0x41   :  { %3798 = vmatprep.mubr.msk.f32.mxu1 %vm28_vm0, %v4077_v1 }
  0x44   :  { %3799 = vmatmul.mubr.msk.f32.vlgmr.msra.gmra.mrb[32].mxu1 %vm28_vm0, %v4082_v2 }
  0x45   :  { %3975 = vmatpush3.bf16.msra.mxu1 %v3972_v27  ;;  %3801 = vmatprep.mubr.msk.f32.mxu1 %vm28_vm0, %v4095_v5 }
  0x46   :  { %3832 = vmatprep.subr.mxu1 %v3407_v28 }
  0x48   :  { %3802 = vmatmul.mubr.msk.f32.gmra.mrb[34].mxu1 %vm28_vm0, %v4107_v8 }
  0x49   :  { %3808 = vmatprep.mubr.msk.f32.mxu1 %vm133_vm1, %v4112_v9 }
  0x4c   :  { %3809 = vmatmul.mubr.msk.f32.vlgmr.msra.gmra.mrb[36].mxu1 %vm133_vm1, %v4127_v12 }
  0x4d   :  { %3833 = vmatpush3.msra.mxu1 %v3407_v28  ;;  %3811 = vmatprep.mubr.msk.f32.mxu1 %vm133_vm1, %v4132_v13 }
  0x4e   :  { %3981 = vmatprep.subr.bf16.mxu1 %v3980_v31 }
  0x50   :  { %3812 = vmatmul.mubr.msk.f32.gmra.mrb[38].mxu1 %vm133_vm1, %v4141_v15 }
  0x51   :  { %3834 = vmatprep.mubr.msk.f32.mxu1 %vm28_vm0, %v4077_v1 }
  0x54   :  { %3835 = vmatmul.mubr.msk.f32.vlgmr.msra.gmra.mrb[40].mxu1 %vm28_vm0, %v4082_v2 }
  0x55   :  { %3983 = vmatpush3.bf16.msra.mxu1 %v3980_v31  ;;  %3837 = vmatprep.mubr.msk.f32.mxu1 %vm28_vm0, %v4095_v5 }
  0x56   :  { %3868 = vmatprep.subr.mxu1 %v3430_v32 }
  0x58   :  { %3838 = vmatmul.mubr.msk.f32.gmra.mrb[42].mxu1 %vm28_vm0, %v4107_v8 }
  0x59   :  { %3844 = vmatprep.mubr.msk.f32.mxu1 %vm133_vm1, %v4112_v9 }
  0x5c   :  { %3845 = vmatmul.mubr.msk.f32.vlgmr.msra.gmra.mrb[44].mxu1 %vm133_vm1, %v4127_v12 }
  0x5d   :  { %3869 = vmatpush3.msra.mxu1 %v3430_v32  ;;  %3847 = vmatprep.mubr.msk.f32.mxu1 %vm133_vm1, %v4132_v13 }
  0x5e   :  { %3989 = vmatprep.subr.bf16.mxu1 %v3988_v35 }
  0x60   :  { %3848 = vmatmul.mubr.msk.f32.gmra.mrb[46].mxu1 %vm133_vm1, %v4141_v15 }
  0x61   :  { %3870 = vmatprep.mubr.msk.f32.mxu1 %vm28_vm0, %v4077_v1 }
  0x64   :  { %3871 = vmatmul.mubr.msk.f32.vlgmr.msra.gmra.mrb[48].mxu1 %vm28_vm0, %v4082_v2 }
  0x65   :  { %3991 = vmatpush3.bf16.msra.mxu1 %v3988_v35  ;;  %3873 = vmatprep.mubr.msk.f32.mxu1 %vm28_vm0, %v4095_v5 }
  0x66   :  { %3904 = vmatprep.subr.mxu1 %v3453_v39 }
  0x68   :  { %3874 = vmatmul.mubr.msk.f32.gmra.mrb[50].mxu1 %vm28_vm0, %v4107_v8 }
  0x69   :  { %3880 = vmatprep.mubr.msk.f32.mxu1 %vm133_vm1, %v4112_v9 }
  0x6c   :  { %3881 = vmatmul.mubr.msk.f32.vlgmr.msra.gmra.mrb[52].mxu1 %vm133_vm1, %v4127_v12 }
  0x6d   :  { %3905 = vmatpush3.msra.mxu1 %v3453_v39  ;;  %3883 = vmatprep.mubr.msk.f32.mxu1 %vm133_vm1, %v4132_v13 }
  0x6e   :  { %3997 = vmatprep.subr.bf16.mxu1 %v3996_v43 }
  0x70   :  { %3884 = vmatmul.mubr.msk.f32.gmra.mrb[54].mxu1 %vm133_vm1, %v4141_v15 }
  0x71   :  { %3906 = vmatprep.mubr.msk.f32.mxu1 %vm28_vm0, %v4077_v1 }
  0x74   :  { %3907 = vmatmul.mubr.msk.f32.vlgmr.msra.gmra.mrb[56].mxu1 %vm28_vm0, %v4082_v2 }
  0x75   :  { %3999 = vmatpush3.bf16.msra.mxu1 %v3996_v43  ;;  %3909 = vmatprep.mubr.msk.f32.mxu1 %vm28_vm0, %v4095_v5 }
  0x78   :  { %3910 = vmatmul.mubr.msk.f32.gmra.mrb[58].mxu1 %vm28_vm0, %v4107_v8 }
  0x79   :  { %3916 = vmatprep.mubr.msk.f32.mxu1 %vm133_vm1, %v4112_v9 }
  0x7c   :  { %3917 = vmatmul.mubr.msk.f32.vlgmr.msra.gmra.mrb[60].mxu1 %vm133_vm1, %v4127_v12 }
  0x7d   :  { %3919 = vmatprep.mubr.msk.f32.mxu1 %vm133_vm1, %v4132_v13 }
  0x80   :  { %3920 = vmatmul.mubr.msk.f32.gmra.mrb[62].mxu1 %vm133_vm1, %v4141_v15 }
  0xd7   :  { %v3656_v44 = vpop.f32.mrb[0].mxu1 }
  0xd8   :  { %v107_v45 = vpop.f32.mrb[1].mxu1 }
  0xdb   :  { %v3659_v46 = vpop.f32.mrb[2].mxu1 }
  0xdc   :  { %v117_v47 = vpop.f32.mrb[3].mxu1 }
  0xdf   :  { %v3666_v48 = vpop.f32.mrb[4].mxu1 }
  0xe0   :  { %v212_v49 = vpop.f32.mrb[5].mxu1 }
  0xe1   :  { %3674 = vmatprep.mubr.msk.f32.mxu0 %vm133_vm1, %v212_v49 }
  0xe2   :  { %3675 = vmatmul.mubr.msk.f32.vlgmr.msra.gmra.mrb[0].mxu0 %vm133_vm1, %v3666_v48 }
  0xe3   :  { %v3669_v50 = vpop.f32.mrb[6].mxu1  ;;  %3681 = vmatpush3.msra.mxu0 %v4288_v40 }
  0xe4   :  { %v222_v51 = vpop.f32.mrb[7].mxu1  ;;  %3953 = vmatprep.subr.bf16.mxu0 %v4272_v38 }
  0xe5   :  { %3677 = vmatprep.mubr.msk.f32.mxu0 %vm133_vm1, %v222_v51 }
  0xe6   :  { %3678 = vmatmul.mubr.msk.f32.gmra.mrb[2].mxu0 %vm133_vm1, %v3669_v50 }
  0xe7   :  { %3682 = vmatprep.mubr.msk.f32.mxu0 %vm28_vm0, %v107_v45  ;;  %v3692_v52 = vpop.f32.mrb[8].mxu1 }
  0xe8   :  { %v516_v53 = vpop.f32.mrb[9].mxu1 }
  0xea   :  { %3683 = vmatmul.mubr.msk.f32.vlgmr.msra.gmra.mrb[0].mxu0 %vm28_vm0, %v3656_v44 }
  0xeb   :  { %3685 = vmatprep.mubr.msk.f32.mxu0 %vm28_vm0, %v117_v47  ;;  %v3695_v54 = vpop.f32.mrb[10].mxu1  ;;  %3955 = vmatpush3.bf16.msra.mxu0 %v4272_v38 }
  0xec   :  { %v526_v55 = vpop.f32.mrb[11].mxu1  ;;  %3716 = vmatprep.subr.mxu0 %v4288_v40 }
  0xee   :  { %3686 = vmatmul.mubr.msk.f32.gmra.mrb[2].mxu0 %vm28_vm0, %v3659_v46 }
  0xef   :  { %v3702_v56 = vpop.f32.mrb[12].mxu1 }
  0xf0   :  { %v621_v57 = vpop.f32.mrb[13].mxu1 }
  0xf1   :  { %3710 = vmatprep.mubr.msk.f32.mxu0 %vm133_vm1, %v621_v57 }
  0xf2   :  { %3711 = vmatmul.mubr.msk.f32.vlgmr.msra.gmra.mrb[4].mxu0 %vm133_vm1, %v3702_v56 }
  0xf3   :  { %v3705_v58 = vpop.f32.mrb[14].mxu1  ;;  %3717 = vmatpush3.msra.mxu0 %v4288_v40 }
  0xf4   :  { %v631_v59 = vpop.f32.mrb[15].mxu1  ;;  %3961 = vmatprep.subr.bf16.mxu0 %v4272_v38 }
  0xf5   :  { %3713 = vmatprep.mubr.msk.f32.mxu0 %vm133_vm1, %v631_v59 }
  0xf6   :  { %3714 = vmatmul.mubr.msk.f32.gmra.mrb[6].mxu0 %vm133_vm1, %v3705_v58 }
  0xf7   :  { %3718 = vmatprep.mubr.msk.f32.mxu0 %vm28_vm0, %v516_v53  ;;  %v3728_v60 = vpop.f32.mrb[16].mxu1 }
  0xf8   :  { %v925_v61 = vpop.f32.mrb[17].mxu1 }
  0xfa   :  { %3719 = vmatmul.mubr.msk.f32.vlgmr.msra.gmra.mrb[4].mxu0 %vm28_vm0, %v3692_v52 }
  0xfb   :  { %3721 = vmatprep.mubr.msk.f32.mxu0 %vm28_vm0, %v526_v55  ;;  %v3731_v62 = vpop.f32.mrb[18].mxu1  ;;  %3963 = vmatpush3.bf16.msra.mxu0 %v4272_v38 }
  0xfc   :  { %v935_v63 = vpop.f32.mrb[19].mxu1  ;;  %3752 = vmatprep.subr.mxu0 %v4288_v40 }
  0xfe   :  { %3722 = vmatmul.mubr.msk.f32.gmra.mrb[6].mxu0 %vm28_vm0, %v3695_v54 }
  0xff   :  { %v3738_v0 = vpop.f32.mrb[20].mxu1 }
 0x100   :  { %v1030_v1 = vpop.f32.mrb[21].mxu1 }
 0x101   :  { %3746 = vmatprep.mubr.msk.f32.mxu0 %vm133_vm1, %v1030_v1 }
 0x102   :  { %3747 = vmatmul.mubr.msk.f32.vlgmr.msra.gmra.mrb[8].mxu0 %vm133_vm1, %v3738_v0 }
 0x103   :  { %v3741_v2 = vpop.f32.mrb[22].mxu1  ;;  %3753 = vmatpush3.msra.mxu0 %v4288_v40 }
 0x104   :  { %v1040_v3 = vpop.f32.mrb[23].mxu1  ;;  %3969 = vmatprep.subr.bf16.mxu0 %v4272_v38 }
 0x105   :  { %3749 = vmatprep.mubr.msk.f32.mxu0 %vm133_vm1, %v1040_v3 }
 0x106   :  { %3750 = vmatmul.mubr.msk.f32.gmra.mrb[10].mxu0 %vm133_vm1, %v3741_v2 }
 0x107   :  { %3754 = vmatprep.mubr.msk.f32.mxu0 %vm28_vm0, %v925_v61  ;;  %v3764_v4 = vpop.f32.mrb[24].mxu1 }
 0x108   :  { %v1334_v5 = vpop.f32.mrb[25].mxu1 }
 0x10a   :  { %3755 = vmatmul.mubr.msk.f32.vlgmr.msra.gmra.mrb[8].mxu0 %vm28_vm0, %v3728_v60 }
 0x10b   :  { %3757 = vmatprep.mubr.msk.f32.mxu0 %vm28_vm0, %v935_v63  ;;  %v3767_v6 = vpop.f32.mrb[26].mxu1  ;;  %3971 = vmatpush3.bf16.msra.mxu0 %v4272_v38 }
 0x10c   :  { %v1344_v7 = vpop.f32.mrb[27].mxu1  ;;  %3788 = vmatprep.subr.mxu0 %v4288_v40 }
 0x10e   :  { %3758 = vmatmul.mubr.msk.f32.gmra.mrb[10].mxu0 %vm28_vm0, %v3731_v62 }
 0x10f   :  { %v3774_v8 = vpop.f32.mrb[28].mxu1 }
 0x110   :  { %v1439_v9 = vpop.f32.mrb[29].mxu1 }
 0x111   :  { %3782 = vmatprep.mubr.msk.f32.mxu0 %vm133_vm1, %v1439_v9 }
 0x112   :  { %3783 = vmatmul.mubr.msk.f32.vlgmr.msra.gmra.mrb[12].mxu0 %vm133_vm1, %v3774_v8 }
 0x113   :  { %v3777_v10 = vpop.f32.mrb[30].mxu1  ;;  %3789 = vmatpush3.msra.mxu0 %v4288_v40 }
 0x114   :  { %v1449_v11 = vpop.f32.mrb[31].mxu1  ;;  %3977 = vmatprep.subr.bf16.mxu0 %v4272_v38 }
 0x115   :  { %3785 = vmatprep.mubr.msk.f32.mxu0 %vm133_vm1, %v1449_v11 }
 0x116   :  { %3786 = vmatmul.mubr.msk.f32.gmra.mrb[14].mxu0 %vm133_vm1, %v3777_v10 }
 0x117   :  { %3790 = vmatprep.mubr.msk.f32.mxu0 %vm28_vm0, %v1334_v5  ;;  %v3800_v12 = vpop.f32.mrb[32].mxu1 }
 0x118   :  { %v1743_v13 = vpop.f32.mrb[33].mxu1 }
 0x11a   :  { %3791 = vmatmul.mubr.msk.f32.vlgmr.msra.gmra.mrb[12].mxu0 %vm28_vm0, %v3764_v4 }
 0x11b   :  { %3793 = vmatprep.mubr.msk.f32.mxu0 %vm28_vm0, %v1344_v7  ;;  %v3803_v14 = vpop.f32.mrb[34].mxu1  ;;  %3979 = vmatpush3.bf16.msra.mxu0 %v4272_v38 }
 0x11c   :  { %v1753_v15 = vpop.f32.mrb[35].mxu1  ;;  %3824 = vmatprep.subr.mxu0 %v4288_v40 }
 0x11e   :  { %3794 = vmatmul.mubr.msk.f32.gmra.mrb[14].mxu0 %vm28_vm0, %v3767_v6 }
 0x11f   :  { %v3810_v16 = vpop.f32.mrb[36].mxu1 }
 0x120   :  { %v1848_v17 = vpop.f32.mrb[37].mxu1 }
 0x121   :  { %3818 = vmatprep.mubr.msk.f32.mxu0 %vm133_vm1, %v1848_v17 }
 0x122   :  { %3819 = vmatmul.mubr.msk.f32.vlgmr.msra.gmra.mrb[16].mxu0 %vm133_vm1, %v3810_v16 }
 0x123   :  { %v3813_v18 = vpop.f32.mrb[38].mxu1  ;;  %3825 = vmatpush3.msra.mxu0 %v4288_v40 }
 0x124   :  { %v1858_v19 = vpop.f32.mrb[39].mxu1  ;;  %3985 = vmatprep.subr.bf16.mxu0 %v4272_v38 }
 0x125   :  { %3821 = vmatprep.mubr.msk.f32.mxu0 %vm133_vm1, %v1858_v19 }
 0x126   :  { %3822 = vmatmul.mubr.msk.f32.gmra.mrb[18].mxu0 %vm133_vm1, %v3813_v18 }
 0x127   :  { %3826 = vmatprep.mubr.msk.f32.mxu0 %vm28_vm0, %v1743_v13  ;;  %v3836_v20 = vpop.f32.mrb[40].mxu1 }
 0x128   :  { %v2152_v21 = vpop.f32.mrb[41].mxu1 }
 0x12a   :  { %3827 = vmatmul.mubr.msk.f32.vlgmr.msra.gmra.mrb[16].mxu0 %vm28_vm0, %v3800_v12 }
 0x12b   :  { %3829 = vmatprep.mubr.msk.f32.mxu0 %vm28_vm0, %v1753_v15  ;;  %v3839_v22 = vpop.f32.mrb[42].mxu1  ;;  %3987 = vmatpush3.bf16.msra.mxu0 %v4272_v38 }
 0x12c   :  { %v2162_v23 = vpop.f32.mrb[43].mxu1  ;;  %3860 = vmatprep.subr.mxu0 %v4288_v40 }
 0x12e   :  { %3830 = vmatmul.mubr.msk.f32.gmra.mrb[18].mxu0 %vm28_vm0, %v3803_v14 }
 0x12f   :  { %v3846_v24 = vpop.f32.mrb[44].mxu1 }
 0x130   :  { %v2257_v25 = vpop.f32.mrb[45].mxu1 }
 0x131   :  { %3854 = vmatprep.mubr.msk.f32.mxu0 %vm133_vm1, %v2257_v25 }
 0x132   :  { %3855 = vmatmul.mubr.msk.f32.vlgmr.msra.gmra.mrb[20].mxu0 %vm133_vm1, %v3846_v24 }
 0x133   :  { %v3849_v26 = vpop.f32.mrb[46].mxu1  ;;  %3861 = vmatpush3.msra.mxu0 %v4288_v40 }
 0x134   :  { %v2267_v27 = vpop.f32.mrb[47].mxu1  ;;  %3993 = vmatprep.subr.bf16.mxu0 %v4272_v38 }
 0x135   :  { %3857 = vmatprep.mubr.msk.f32.mxu0 %vm133_vm1, %v2267_v27 }
 0x136   :  { %3858 = vmatmul.mubr.msk.f32.gmra.mrb[22].mxu0 %vm133_vm1, %v3849_v26 }
 0x137   :  { %3862 = vmatprep.mubr.msk.f32.mxu0 %vm28_vm0, %v2152_v21  ;;  %v3872_v28 = vpop.f32.mrb[48].mxu1 }
 0x138   :  { %v2561_v29 = vpop.f32.mrb[49].mxu1 }
 0x13a   :  { %3863 = vmatmul.mubr.msk.f32.vlgmr.msra.gmra.mrb[20].mxu0 %vm28_vm0, %v3836_v20 }
 0x13b   :  { %3865 = vmatprep.mubr.msk.f32.mxu0 %vm28_vm0, %v2162_v23  ;;  %v3875_v30 = vpop.f32.mrb[50].mxu1  ;;  %3995 = vmatpush3.bf16.msra.mxu0 %v4272_v38 }
 0x13c   :  { %v2571_v31 = vpop.f32.mrb[51].mxu1  ;;  %3896 = vmatprep.subr.mxu0 %v4288_v40 }
 0x13e   :  { %3866 = vmatmul.mubr.msk.f32.gmra.mrb[22].mxu0 %vm28_vm0, %v3839_v22 }
 0x13f   :  { %v3882_v32 = vpop.f32.mrb[52].mxu1 }
 0x140   :  { %v2666_v33 = vpop.f32.mrb[53].mxu1 }
 0x141   :  { %3890 = vmatprep.mubr.msk.f32.mxu0 %vm133_vm1, %v2666_v33 }
 0x142   :  { %3891 = vmatmul.mubr.msk.f32.vlgmr.msra.gmra.mrb[24].mxu0 %vm133_vm1, %v3882_v32 }
 0x143   :  { %v3885_v34 = vpop.f32.mrb[54].mxu1  ;;  %3897 = vmatpush3.msra.mxu0 %v4288_v40 }
 0x144   :  { %v2676_v35 = vpop.f32.mrb[55].mxu1  ;;  %4001 = vmatprep.subr.bf16.mxu0 %v4272_v38 }
 0x145   :  { %3893 = vmatprep.mubr.msk.f32.mxu0 %vm133_vm1, %v2676_v35 }
 0x146   :  { %3894 = vmatmul.mubr.msk.f32.gmra.mrb[26].mxu0 %vm133_vm1, %v3885_v34 }
 0x147   :  { %3898 = vmatprep.mubr.msk.f32.mxu0 %vm28_vm0, %v2561_v29  ;;  %v3908_v36 = vpop.f32.mrb[56].mxu1 }
 0x148   :  { %v2970_v37 = vpop.f32.mrb[57].mxu1 }
 0x14a   :  { %3899 = vmatmul.mubr.msk.f32.vlgmr.msra.gmra.mrb[24].mxu0 %vm28_vm0, %v3872_v28 }
 0x14b   :  { %3901 = vmatprep.mubr.msk.f32.mxu0 %vm28_vm0, %v2571_v31  ;;  %v3911_v39 = vpop.f32.mrb[58].mxu1  ;;  %4003 = vmatpush3.bf16.msra.mxu0 %v4272_v38 }
 0x14c   :  { %v2980_v41 = vpop.f32.mrb[59].mxu1  ;;  %3932 = vmatprep.subr.mxu0 %v4288_v40 }
 0x14e   :  { %3902 = vmatmul.mubr.msk.f32.gmra.mrb[26].mxu0 %vm28_vm0, %v3875_v30 }
 0x14f   :  { %v3918_v42 = vpop.f32.mrb[60].mxu1 }
 0x150   :  { %v3075_v43 = vpop.f32.mrb[61].mxu1 }
 0x151   :  { %3926 = vmatprep.mubr.msk.f32.mxu0 %vm133_vm1, %v3075_v43 }
 0x152   :  { %3927 = vmatmul.mubr.msk.f32.vlgmr.msra.gmra.mrb[28].mxu0 %vm133_vm1, %v3918_v42 }
 0x153   :  { %v3921_v44 = vpop.f32.mrb[62].mxu1  ;;  %3933 = vmatpush3.msra.mxu0 %v4288_v40 }
 0x154   :  { %v3085_v45 = vpop.f32.mrb[63].mxu1 }
 0x155   :  { %3929 = vmatprep.mubr.msk.f32.mxu0 %vm133_vm1, %v3085_v45 }
 0x156   :  { %3930 = vmatmul.mubr.msk.f32.gmra.mrb[30].mxu0 %vm133_vm1, %v3921_v44 }
 0x157   :  { %3934 = vmatprep.mubr.msk.f32.mxu0 %vm28_vm0, %v2970_v37 }
 0x15a   :  { %3935 = vmatmul.mubr.msk.f32.vlgmr.msra.gmra.mrb[28].mxu0 %vm28_vm0, %v3908_v36 }
 0x15b   :  { %3937 = vmatprep.mubr.msk.f32.mxu0 %vm28_vm0, %v2980_v41 }
 0x15e   :  { %3938 = vmatmul.mubr.msk.f32.gmra.mrb[30].mxu0 %vm28_vm0, %v3911_v39 }
 0x1bd   :  { %v3684_v38 = vpop.f32.mrb[0].mxu0 }
 0x1be   :  { %429 = vst.msk [vmem:[%s4554_s6 + $0x8] sm:$0xff] %vm427_vm2, %v3684_v38  ;;  %v408_v40 = vpop.f32.mrb[1].mxu0 }
 0x1bf   :  { %428 = vst.msk [vmem:[%s4554_s6] sm:$0xff] %vm427_vm2, %v408_v40 }
 0x1c1   :  { %v3687_v46 = vpop.f32.mrb[2].mxu0 }
 0x1c2   :  { %431 = vst.msk [vmem:[%s4554_s6 + $0x18] sm:$0xff] %vm427_vm2, %v3687_v46  ;;  %v418_v47 = vpop.f32.mrb[3].mxu0 }
 0x1c3   :  { %430 = vst.msk [vmem:[%s4554_s6 + $0x10] sm:$0xff] %vm427_vm2, %v418_v47 }
 0x1cd   :  { %v3720_v48 = vpop.f32.mrb[4].mxu0 }
 0x1ce   :  { %3335 = vst.msk [vmem:[%s4554_s6 + $0x28] sm:$0xff] %vm427_vm2, %v3720_v48  ;;  %v817_v49 = vpop.f32.mrb[5].mxu0 }
 0x1cf   :  { %3334 = vst.msk [vmem:[%s4554_s6 + $0x20] sm:$0xff] %vm427_vm2, %v817_v49 }
 0x1d1   :  { %v3723_v50 = vpop.f32.mrb[6].mxu0 }
 0x1d2   :  { %3337 = vst.msk [vmem:[%s4554_s6 + $0x38] sm:$0xff] %vm427_vm2, %v3723_v50  ;;  %v827_v51 = vpop.f32.mrb[7].mxu0 }
 0x1d3   :  { %3336 = vst.msk [vmem:[%s4554_s6 + $0x30] sm:$0xff] %vm427_vm2, %v827_v51 }
 0x1dd   :  { %v3756_v52 = vpop.f32.mrb[8].mxu0 }
 0x1de   :  { %3358 = vst.msk [vmem:[%s4554_s6 + $0x48] sm:$0xff] %vm427_vm2, %v3756_v52  ;;  %v1226_v53 = vpop.f32.mrb[9].mxu0 }
 0x1df   :  { %3357 = vst.msk [vmem:[%s4554_s6 + $0x40] sm:$0xff] %vm427_vm2, %v1226_v53 }
 0x1e1   :  { %v3759_v54 = vpop.f32.mrb[10].mxu0 }
 0x1e2   :  { %3360 = vst.msk [vmem:[%s4554_s6 + $0x58] sm:$0xff] %vm427_vm2, %v3759_v54  ;;  %v1236_v55 = vpop.f32.mrb[11].mxu0 }
 0x1e3   :  { %3359 = vst.msk [vmem:[%s4554_s6 + $0x50] sm:$0xff] %vm427_vm2, %v1236_v55 }
 0x1ed   :  { %v3792_v56 = vpop.f32.mrb[12].mxu0 }
 0x1ee   :  { %3381 = vst.msk [vmem:[%s4554_s6 + $0x68] sm:$0xff] %vm427_vm2, %v3792_v56  ;;  %v1635_v57 = vpop.f32.mrb[13].mxu0 }
 0x1ef   :  { %3380 = vst.msk [vmem:[%s4554_s6 + $0x60] sm:$0xff] %vm427_vm2, %v1635_v57 }
 0x1f1   :  { %v3795_v58 = vpop.f32.mrb[14].mxu0 }
 0x1f2   :  { %3383 = vst.msk [vmem:[%s4554_s6 + $0x78] sm:$0xff] %vm427_vm2, %v3795_v58  ;;  %v1645_v59 = vpop.f32.mrb[15].mxu0 }
 0x1f3   :  { %3382 = vst.msk [vmem:[%s4554_s6 + $0x70] sm:$0xff] %vm427_vm2, %v1645_v59 }
 0x1fd   :  { %v3828_v60 = vpop.f32.mrb[16].mxu0 }
 0x1fe   :  { %3404 = vst.msk [vmem:[%s4554_s6 + $0x88] sm:$0xff] %vm427_vm2, %v3828_v60  ;;  %v2044_v61 = vpop.f32.mrb[17].mxu0 }
 0x1ff   :  { %3403 = vst.msk [vmem:[%s4554_s6 + $0x80] sm:$0xff] %vm427_vm2, %v2044_v61 }
 0x201   :  { %v3831_v62 = vpop.f32.mrb[18].mxu0 }
 0x202   :  { %3406 = vst.msk [vmem:[%s4554_s6 + $0x98] sm:$0xff] %vm427_vm2, %v3831_v62  ;;  %v2054_v63 = vpop.f32.mrb[19].mxu0 }
 0x203   :  { %3405 = vst.msk [vmem:[%s4554_s6 + $0x90] sm:$0xff] %vm427_vm2, %v2054_v63 }
 0x20d   :  { %v3864_v0 = vpop.f32.mrb[20].mxu0 }
 0x20e   :  { %3427 = vst.msk [vmem:[%s4554_s6 + $0xa8] sm:$0xff] %vm427_vm2, %v3864_v0  ;;  %v2453_v1 = vpop.f32.mrb[21].mxu0 }
 0x20f   :  { %3426 = vst.msk [vmem:[%s4554_s6 + $0xa0] sm:$0xff] %vm427_vm2, %v2453_v1 }
 0x211   :  { %v3867_v2 = vpop.f32.mrb[22].mxu0 }
 0x212   :  { %3429 = vst.msk [vmem:[%s4554_s6 + $0xb8] sm:$0xff] %vm427_vm2, %v3867_v2  ;;  %v2463_v3 = vpop.f32.mrb[23].mxu0 }
 0x213   :  { %3428 = vst.msk [vmem:[%s4554_s6 + $0xb0] sm:$0xff] %vm427_vm2, %v2463_v3 }
 0x21d   :  { %v3900_v4 = vpop.f32.mrb[24].mxu0 }
 0x21e   :  { %3450 = vst.msk [vmem:[%s4554_s6 + $0xc8] sm:$0xff] %vm427_vm2, %v3900_v4  ;;  %v2862_v5 = vpop.f32.mrb[25].mxu0 }
 0x21f   :  { %3449 = vst.msk [vmem:[%s4554_s6 + $0xc0] sm:$0xff] %vm427_vm2, %v2862_v5 }
 0x221   :  { %v3903_v6 = vpop.f32.mrb[26].mxu0 }
 0x222   :  { %3452 = vst.msk [vmem:[%s4554_s6 + $0xd8] sm:$0xff] %vm427_vm2, %v3903_v6  ;;  %v2872_v7 = vpop.f32.mrb[27].mxu0 }
 0x223   :  { %3451 = vst.msk [vmem:[%s4554_s6 + $0xd0] sm:$0xff] %vm427_vm2, %v2872_v7 }
 0x22d   :  { %v3936_v8 = vpop.f32.mrb[28].mxu0 }
 0x22e   :  { %3473 = vst.msk [vmem:[%s4554_s6 + $0xe8] sm:$0xff] %vm427_vm2, %v3936_v8  ;;  %v3271_v9 = vpop.f32.mrb[29].mxu0 }
 0x22f   :  { %3472 = vst.msk [vmem:[%s4554_s6 + $0xe0] sm:$0xff] %vm427_vm2, %v3271_v9 }
 0x231   :  { %v3939_v10 = vpop.f32.mrb[30].mxu0 }
 0x232   :  { %3475 = vst.msk [vmem:[%s4554_s6 + $0xf8] sm:$0xff] %vm427_vm2, %v3939_v10  ;;  %v3281_v11 = vpop.f32.mrb[31].mxu0 }
 0x233   :  { %3474 = vst.msk [vmem:[%s4554_s6 + $0xf0] sm:$0xff] %vm427_vm2, %v3281_v11 }

// kernel: pose_estimation_ae_group_forward.11
= control target key start
LH: loop header
LB: loop body
LE: loop exit
PB: predicated region body
PF: predicated region fallthrough
CT: control target
= control target key end

     0   :  { %vm19_vm0 = vcmask 64512   ;;  %vm215_vm1 = vcmask 261120   ;;  %s2242_s0 = inlined_call_operand.vmem [shape: f32[8,8,8], index: 0, kind: input, shape index: {}]   ;;  %s2243_s1 = inlined_call_operand.vmem [shape: f32[32,8], index: 1, kind: input, shape index: {}]   ;;  %s2244_s2 = inlined_call_operand.vmem [shape: f32[8,32], index: 2, kind: input, shape index: {}]   ;;  %s2245_s3 = inlined_call_operand.vmem [shape: f32[8,32,32], index: 3, kind: output, shape index: {}]  }
   0x1   :  { %v18_v0 = vld [vmem:[%s2242_s0] sm:$0xff]  ;;  %v15_v2 = vld [vmem:[%s2243_s1 + $0x8] sm:$0xff]  ;;  %v16_v4 = vld [vmem:[%s2243_s1 + $0x10] sm:$0xff] }
   0x2   :  { %v14_v1 = vld [vmem:[%s2243_s1] sm:$0xff]  ;;  %1845 = vmatprep.subr.mxu0 %v18_v0  ;;  %v1674_v3 = vld [vmem:[%s2242_s0 + $0x8] sm:$0xff]  ;;  %v1687_v5 = vld [vmem:[%s2242_s0 + $0x10] sm:$0xff] }
   0x3   :  { %1847 = vmatprep.mubr.msk.f32.mxu0 %vm19_vm0, %v14_v1  ;;  %1846 = vmatpush3.msra.mxu0 %v18_v0  ;;  %v17_v6 = vld [vmem:[%s2243_s1 + $0x18] sm:$0xff]  ;;  %v1713_v8 = vld [vmem:[%s2242_s0 + $0x20] sm:$0xff]  ;;  %v1726_v9 = vld [vmem:[%s2242_s0 + $0x28] sm:$0xff] }
   0x4   :  { %1848 = vmatmul.mubr.msk.f32.vlgmr.msra.gmra.mrb[0].mxu0 %vm19_vm0, %v15_v2  ;;  %1861 = vmatprep.subr.mxu0 %v1674_v3  ;;  %v1700_v7 = vld [vmem:[%s2242_s0 + $0x18] sm:$0xff]  ;;  %v1739_v10 = vld [vmem:[%s2242_s0 + $0x30] sm:$0xff]  ;;  %v2064_v12 = vld [vmem:[%s2244_s2] sm:$0xff] }
   0x5   :  { %1862 = vmatpush3.msra.mxu0 %v1674_v3  ;;  %1850 = vmatprep.mubr.msk.f32.mxu0 %vm19_vm0, %v16_v4  ;;  %v1752_v11 = vld [vmem:[%s2242_s0 + $0x38] sm:$0xff] }
   0x6   :  { %1877 = vmatprep.subr.mxu0 %v1687_v5  ;;  %1853 = vmatprep.subr.mxu1 %v2064_v12 }
   0x7   :  { %1854 = vmatpush3.msra.mxu1 %v2064_v12 }
   0x8   :  { %1851 = vmatmul.mubr.msk.f32.gmra.mrb[2].mxu0 %vm19_vm0, %v17_v6  ;;  %1869 = vmatprep.subr.mxu1 %v2064_v12 }
   0x9   :  { %1863 = vmatprep.mubr.msk.f32.mxu0 %vm19_vm0, %v14_v1 }
   0xc   :  { %1864 = vmatmul.mubr.msk.f32.vlgmr.msra.gmra.mrb[4].mxu0 %vm19_vm0, %v15_v2 }
   0xd   :  { %1878 = vmatpush3.msra.mxu0 %v1687_v5  ;;  %1866 = vmatprep.mubr.msk.f32.mxu0 %vm19_vm0, %v16_v4 }
   0xe   :  { %1893 = vmatprep.subr.mxu0 %v1700_v7 }
  0x10   :  { %1867 = vmatmul.mubr.msk.f32.gmra.mrb[6].mxu0 %vm19_vm0, %v17_v6 }
  0x11   :  { %1879 = vmatprep.mubr.msk.f32.mxu0 %vm19_vm0, %v14_v1 }
  0x14   :  { %1880 = vmatmul.mubr.msk.f32.vlgmr.msra.gmra.mrb[8].mxu0 %vm19_vm0, %v15_v2 }
  0x15   :  { %1894 = vmatpush3.msra.mxu0 %v1700_v7  ;;  %1882 = vmatprep.mubr.msk.f32.mxu0 %vm19_vm0, %v16_v4 }
  0x16   :  { %1909 = vmatprep.subr.mxu0 %v1713_v8 }
  0x18   :  { %1883 = vmatmul.mubr.msk.f32.gmra.mrb[10].mxu0 %vm19_vm0, %v17_v6 }
  0x19   :  { %1895 = vmatprep.mubr.msk.f32.mxu0 %vm19_vm0, %v14_v1 }
  0x1c   :  { %1896 = vmatmul.mubr.msk.f32.vlgmr.msra.gmra.mrb[12].mxu0 %vm19_vm0, %v15_v2 }
  0x1d   :  { %1910 = vmatpush3.msra.mxu0 %v1713_v8  ;;  %1898 = vmatprep.mubr.msk.f32.mxu0 %vm19_vm0, %v16_v4 }
  0x1e   :  { %1925 = vmatprep.subr.mxu0 %v1726_v9 }
  0x20   :  { %1899 = vmatmul.mubr.msk.f32.gmra.mrb[14].mxu0 %vm19_vm0, %v17_v6 }
  0x21   :  { %1911 = vmatprep.mubr.msk.f32.mxu0 %vm19_vm0, %v14_v1 }
  0x24   :  { %1912 = vmatmul.mubr.msk.f32.vlgmr.msra.gmra.mrb[16].mxu0 %vm19_vm0, %v15_v2 }
  0x25   :  { %1926 = vmatpush3.msra.mxu0 %v1726_v9  ;;  %1914 = vmatprep.mubr.msk.f32.mxu0 %vm19_vm0, %v16_v4 }
  0x26   :  { %1941 = vmatprep.subr.mxu0 %v1739_v10 }
  0x28   :  { %1915 = vmatmul.mubr.msk.f32.gmra.mrb[18].mxu0 %vm19_vm0, %v17_v6 }
  0x29   :  { %1927 = vmatprep.mubr.msk.f32.mxu0 %vm19_vm0, %v14_v1 }
  0x2c   :  { %1928 = vmatmul.mubr.msk.f32.vlgmr.msra.gmra.mrb[20].mxu0 %vm19_vm0, %v15_v2 }
  0x2d   :  { %1942 = vmatpush3.msra.mxu0 %v1739_v10  ;;  %1930 = vmatprep.mubr.msk.f32.mxu0 %vm19_vm0, %v16_v4 }
  0x2e   :  { %1957 = vmatprep.subr.mxu0 %v1752_v11 }
  0x30   :  { %1931 = vmatmul.mubr.msk.f32.gmra.mrb[22].mxu0 %vm19_vm0, %v17_v6 }
  0x31   :  { %1943 = vmatprep.mubr.msk.f32.mxu0 %vm19_vm0, %v14_v1 }
  0x34   :  { %1944 = vmatmul.mubr.msk.f32.vlgmr.msra.gmra.mrb[24].mxu0 %vm19_vm0, %v15_v2 }
  0x35   :  { %1958 = vmatpush3.msra.mxu0 %v1752_v11  ;;  %1946 = vmatprep.mubr.msk.f32.mxu0 %vm19_vm0, %v16_v4 }
  0x38   :  { %1947 = vmatmul.mubr.msk.f32.gmra.mrb[26].mxu0 %vm19_vm0, %v17_v6 }
  0x39   :  { %1959 = vmatprep.mubr.msk.f32.mxu0 %vm19_vm0, %v14_v1 }
  0x3c   :  { %1960 = vmatmul.mubr.msk.f32.vlgmr.msra.gmra.mrb[28].mxu0 %vm19_vm0, %v15_v2 }
  0x3d   :  { %1962 = vmatprep.mubr.msk.f32.mxu0 %vm19_vm0, %v16_v4 }
  0x40   :  { %1963 = vmatmul.mubr.msk.f32.gmra.mrb[30].mxu0 %vm19_vm0, %v17_v6 }
  0xd7   :  { %v1849_v13 = vpop.f32.mrb[0].mxu0 }
  0xd8   :  { %v98_v14 = vpop.f32.mrb[1].mxu0 }
  0xd9   :  { %1855 = vmatprep.mubr.msk.f32.mxu1 %vm19_vm0, %v98_v14 }
  0xda   :  { %1856 = vmatmul.mubr.msk.f32.vlgmr.msra.gmra.mrb[0].mxu1 %vm19_vm0, %v1849_v13 }
  0xdb   :  { %v1852_v15 = vpop.f32.mrb[2].mxu0  ;;  %1870 = vmatpush3.msra.mxu1 %v2064_v12 }
  0xdc   :  { %v108_v16 = vpop.f32.mrb[3].mxu0  ;;  %1885 = vmatprep.subr.mxu1 %v2064_v12 }
  0xdd   :  { %1858 = vmatprep.mubr.msk.f32.mxu1 %vm19_vm0, %v108_v16 }
  0xde   :  { %1859 = vmatmul.mubr.msk.f32.gmra.mrb[2].mxu1 %vm19_vm0, %v1852_v15 }
  0xdf   :  { %v1865_v17 = vpop.f32.mrb[4].mxu0 }
  0xe0   :  { %v304_v18 = vpop.f32.mrb[5].mxu0 }
  0xe1   :  { %1871 = vmatprep.mubr.msk.f32.mxu1 %vm19_vm0, %v304_v18 }
  0xe2   :  { %1872 = vmatmul.mubr.msk.f32.vlgmr.msra.gmra.mrb[4].mxu1 %vm19_vm0, %v1865_v17 }
  0xe3   :  { %v1868_v19 = vpop.f32.mrb[6].mxu0  ;;  %1886 = vmatpush3.msra.mxu1 %v2064_v12 }
  0xe4   :  { %v314_v20 = vpop.f32.mrb[7].mxu0  ;;  %1901 = vmatprep.subr.mxu1 %v2064_v12 }
  0xe5   :  { %1874 = vmatprep.mubr.msk.f32.mxu1 %vm19_vm0, %v314_v20 }
  0xe6   :  { %1875 = vmatmul.mubr.msk.f32.gmra.mrb[6].mxu1 %vm19_vm0, %v1868_v19 }
  0xe7   :  { %v1881_v21 = vpop.f32.mrb[8].mxu0 }
  0xe8   :  { %v510_v22 = vpop.f32.mrb[9].mxu0 }
  0xe9   :  { %1887 = vmatprep.mubr.msk.f32.mxu1 %vm19_vm0, %v510_v22 }
  0xea   :  { %1888 = vmatmul.mubr.msk.f32.vlgmr.msra.gmra.mrb[8].mxu1 %vm19_vm0, %v1881_v21 }
  0xeb   :  { %v1884_v23 = vpop.f32.mrb[10].mxu0  ;;  %1902 = vmatpush3.msra.mxu1 %v2064_v12 }
  0xec   :  { %v520_v24 = vpop.f32.mrb[11].mxu0  ;;  %1917 = vmatprep.subr.mxu1 %v2064_v12 }
  0xed   :  { %1890 = vmatprep.mubr.msk.f32.mxu1 %vm19_vm0, %v520_v24 }
  0xee   :  { %1891 = vmatmul.mubr.msk.f32.gmra.mrb[10].mxu1 %vm19_vm0, %v1884_v23 }
  0xef   :  { %v1897_v25 = vpop.f32.mrb[12].mxu0 }
  0xf0   :  { %v716_v26 = vpop.f32.mrb[13].mxu0 }
  0xf1   :  { %1903 = vmatprep.mubr.msk.f32.mxu1 %vm19_vm0, %v716_v26 }
  0xf2   :  { %1904 = vmatmul.mubr.msk.f32.vlgmr.msra.gmra.mrb[12].mxu1 %vm19_vm0, %v1897_v25 }
  0xf3   :  { %v1900_v27 = vpop.f32.mrb[14].mxu0  ;;  %1918 = vmatpush3.msra.mxu1 %v2064_v12 }
  0xf4   :  { %v726_v28 = vpop.f32.mrb[15].mxu0  ;;  %1933 = vmatprep.subr.mxu1 %v2064_v12 }
  0xf5   :  { %1906 = vmatprep.mubr.msk.f32.mxu1 %vm19_vm0, %v726_v28 }
  0xf6   :  { %1907 = vmatmul.mubr.msk.f32.gmra.mrb[14].mxu1 %vm19_vm0, %v1900_v27 }
  0xf7   :  { %v1913_v29 = vpop.f32.mrb[16].mxu0 }
  0xf8   :  { %v922_v30 = vpop.f32.mrb[17].mxu0 }
  0xf9   :  { %1919 = vmatprep.mubr.msk.f32.mxu1 %vm19_vm0, %v922_v30 }
  0xfa   :  { %1920 = vmatmul.mubr.msk.f32.vlgmr.msra.gmra.mrb[16].mxu1 %vm19_vm0, %v1913_v29 }
  0xfb   :  { %v1916_v31 = vpop.f32.mrb[18].mxu0  ;;  %1934 = vmatpush3.msra.mxu1 %v2064_v12 }
  0xfc   :  { %v932_v32 = vpop.f32.mrb[19].mxu0  ;;  %1949 = vmatprep.subr.mxu1 %v2064_v12 }
  0xfd   :  { %1922 = vmatprep.mubr.msk.f32.mxu1 %vm19_vm0, %v932_v32 }
  0xfe   :  { %1923 = vmatmul.mubr.msk.f32.gmra.mrb[18].mxu1 %vm19_vm0, %v1916_v31 }
  0xff   :  { %v1929_v33 = vpop.f32.mrb[20].mxu0 }
 0x100   :  { %v1128_v34 = vpop.f32.mrb[21].mxu0 }
 0x101   :  { %1935 = vmatprep.mubr.msk.f32.mxu1 %vm19_vm0, %v1128_v34 }
 0x102   :  { %1936 = vmatmul.mubr.msk.f32.vlgmr.msra.gmra.mrb[20].mxu1 %vm19_vm0, %v1929_v33 }
 0x103   :  { %v1932_v35 = vpop.f32.mrb[22].mxu0  ;;  %1950 = vmatpush3.msra.mxu1 %v2064_v12 }
 0x104   :  { %v1138_v36 = vpop.f32.mrb[23].mxu0  ;;  %1965 = vmatprep.subr.mxu1 %v2064_v12 }
 0x105   :  { %1938 = vmatprep.mubr.msk.f32.mxu1 %vm19_vm0, %v1138_v36 }
 0x106   :  { %1939 = vmatmul.mubr.msk.f32.gmra.mrb[22].mxu1 %vm19_vm0, %v1932_v35 }
 0x107   :  { %v1945_v37 = vpop.f32.mrb[24].mxu0 }
 0x108   :  { %v1334_v38 = vpop.f32.mrb[25].mxu0 }
 0x109   :  { %1951 = vmatprep.mubr.msk.f32.mxu1 %vm19_vm0, %v1334_v38 }
 0x10a   :  { %1952 = vmatmul.mubr.msk.f32.vlgmr.msra.gmra.mrb[24].mxu1 %vm19_vm0, %v1945_v37 }
 0x10b   :  { %v1948_v39 = vpop.f32.mrb[26].mxu0  ;;  %1966 = vmatpush3.msra.mxu1 %v2064_v12 }
 0x10c   :  { %v1344_v40 = vpop.f32.mrb[27].mxu0 }
 0x10d   :  { %1954 = vmatprep.mubr.msk.f32.mxu1 %vm19_vm0, %v1344_v40 }
 0x10e   :  { %1955 = vmatmul.mubr.msk.f32.gmra.mrb[26].mxu1 %vm19_vm0, %v1948_v39 }
 0x10f   :  { %v1961_v41 = vpop.f32.mrb[28].mxu0 }
 0x110   :  { %v1540_v42 = vpop.f32.mrb[29].mxu0 }
 0x111   :  { %1967 = vmatprep.mubr.msk.f32.mxu1 %vm19_vm0, %v1540_v42 }
 0x112   :  { %1968 = vmatmul.mubr.msk.f32.vlgmr.msra.gmra.mrb[28].mxu1 %vm19_vm0, %v1961_v41 }
 0x113   :  { %v1964_v43 = vpop.f32.mrb[30].mxu0 }
 0x114   :  { %v1550_v44 = vpop.f32.mrb[31].mxu0 }
 0x115   :  { %1970 = vmatprep.mubr.msk.f32.mxu1 %vm19_vm0, %v1550_v44 }
 0x116   :  { %1971 = vmatmul.mubr.msk.f32.gmra.mrb[30].mxu1 %vm19_vm0, %v1964_v43 }
 0x1ad   :  { %v1857_v45 = vpop.f32.mrb[0].mxu1 }
 0x1ae   :  { %217 = vst.msk [vmem:[%s2245_s3 + $0x8] sm:$0xff] %vm215_vm1, %v1857_v45  ;;  %v196_v46 = vpop.f32.mrb[1].mxu1 }
 0x1af   :  { %216 = vst.msk [vmem:[%s2245_s3] sm:$0xff] %vm215_vm1, %v196_v46 }
 0x1b1   :  { %v1860_v47 = vpop.f32.mrb[2].mxu1 }
 0x1b2   :  { %219 = vst.msk [vmem:[%s2245_s3 + $0x18] sm:$0xff] %vm215_vm1, %v1860_v47  ;;  %v206_v48 = vpop.f32.mrb[3].mxu1 }
 0x1b3   :  { %218 = vst.msk [vmem:[%s2245_s3 + $0x10] sm:$0xff] %vm215_vm1, %v206_v48 }
 0x1b5   :  { %v1873_v49 = vpop.f32.mrb[4].mxu1 }
 0x1b6   :  { %1684 = vst.msk [vmem:[%s2245_s3 + $0x28] sm:$0xff] %vm215_vm1, %v1873_v49  ;;  %v402_v50 = vpop.f32.mrb[5].mxu1 }
 0x1b7   :  { %1683 = vst.msk [vmem:[%s2245_s3 + $0x20] sm:$0xff] %vm215_vm1, %v402_v50 }
 0x1b9   :  { %v1876_v51 = vpop.f32.mrb[6].mxu1 }
 0x1ba   :  { %1686 = vst.msk [vmem:[%s2245_s3 + $0x38] sm:$0xff] %vm215_vm1, %v1876_v51  ;;  %v412_v52 = vpop.f32.mrb[7].mxu1 }
 0x1bb   :  { %1685 = vst.msk [vmem:[%s2245_s3 + $0x30] sm:$0xff] %vm215_vm1, %v412_v52 }
 0x1bd   :  { %v1889_v53 = vpop.f32.mrb[8].mxu1 }
 0x1be   :  { %1697 = vst.msk [vmem:[%s2245_s3 + $0x48] sm:$0xff] %vm215_vm1, %v1889_v53  ;;  %v608_v54 = vpop.f32.mrb[9].mxu1 }
 0x1bf   :  { %1696 = vst.msk [vmem:[%s2245_s3 + $0x40] sm:$0xff] %vm215_vm1, %v608_v54 }
 0x1c1   :  { %v1892_v55 = vpop.f32.mrb[10].mxu1 }
 0x1c2   :  { %1699 = vst.msk [vmem:[%s2245_s3 + $0x58] sm:$0xff] %vm215_vm1, %v1892_v55  ;;  %v618_v56 = vpop.f32.mrb[11].mxu1 }
 0x1c3   :  { %1698 = vst.msk [vmem:[%s2245_s3 + $0x50] sm:$0xff] %vm215_vm1, %v618_v56 }
 0x1c5   :  { %v1905_v57 = vpop.f32.mrb[12].mxu1 }
 0x1c6   :  { %1710 = vst.msk [vmem:[%s2245_s3 + $0x68] sm:$0xff] %vm215_vm1, %v1905_v57  ;;  %v814_v58 = vpop.f32.mrb[13].mxu1 }
 0x1c7   :  { %1709 = vst.msk [vmem:[%s2245_s3 + $0x60] sm:$0xff] %vm215_vm1, %v814_v58 }
 0x1c9   :  { %v1908_v59 = vpop.f32.mrb[14].mxu1 }
 0x1ca   :  { %1712 = vst.msk [vmem:[%s2245_s3 + $0x78] sm:$0xff] %vm215_vm1, %v1908_v59  ;;  %v824_v60 = vpop.f32.mrb[15].mxu1 }
 0x1cb   :  { %1711 = vst.msk [vmem:[%s2245_s3 + $0x70] sm:$0xff] %vm215_vm1, %v824_v60 }
 0x1cd   :  { %v1921_v61 = vpop.f32.mrb[16].mxu1 }
 0x1ce   :  { %1723 = vst.msk [vmem:[%s2245_s3 + $0x88] sm:$0xff] %vm215_vm1, %v1921_v61  ;;  %v1020_v62 = vpop.f32.mrb[17].mxu1 }
 0x1cf   :  { %1722 = vst.msk [vmem:[%s2245_s3 + $0x80] sm:$0xff] %vm215_vm1, %v1020_v62 }
 0x1d1   :  { %v1924_v63 = vpop.f32.mrb[18].mxu1 }
 0x1d2   :  { %1725 = vst.msk [vmem:[%s2245_s3 + $0x98] sm:$0xff] %vm215_vm1, %v1924_v63  ;;  %v1030_v0 = vpop.f32.mrb[19].mxu1 }
 0x1d3   :  { %1724 = vst.msk [vmem:[%s2245_s3 + $0x90] sm:$0xff] %vm215_vm1, %v1030_v0 }
 0x1d5   :  { %v1937_v1 = vpop.f32.mrb[20].mxu1 }
 0x1d6   :  { %1736 = vst.msk [vmem:[%s2245_s3 + $0xa8] sm:$0xff] %vm215_vm1, %v1937_v1  ;;  %v1226_v2 = vpop.f32.mrb[21].mxu1 }
 0x1d7   :  { %1735 = vst.msk [vmem:[%s2245_s3 + $0xa0] sm:$0xff] %vm215_vm1, %v1226_v2 }
 0x1d9   :  { %v1940_v3 = vpop.f32.mrb[22].mxu1 }
 0x1da   :  { %1738 = vst.msk [vmem:[%s2245_s3 + $0xb8] sm:$0xff] %vm215_vm1, %v1940_v3  ;;  %v1236_v4 = vpop.f32.mrb[23].mxu1 }
 0x1db   :  { %1737 = vst.msk [vmem:[%s2245_s3 + $0xb0] sm:$0xff] %vm215_vm1, %v1236_v4 }
 0x1dd   :  { %v1953_v5 = vpop.f32.mrb[24].mxu1 }
 0x1de   :  { %1749 = vst.msk [vmem:[%s2245_s3 + $0xc8] sm:$0xff] %vm215_vm1, %v1953_v5  ;;  %v1432_v6 = vpop.f32.mrb[25].mxu1 }
 0x1df   :  { %1748 = vst.msk [vmem:[%s2245_s3 + $0xc0] sm:$0xff] %vm215_vm1, %v1432_v6 }
 0x1e1   :  { %v1956_v7 = vpop.f32.mrb[26].mxu1 }
 0x1e2   :  { %1751 = vst.msk [vmem:[%s2245_s3 + $0xd8] sm:$0xff] %vm215_vm1, %v1956_v7  ;;  %v1442_v8 = vpop.f32.mrb[27].mxu1 }
 0x1e3   :  { %1750 = vst.msk [vmem:[%s2245_s3 + $0xd0] sm:$0xff] %vm215_vm1, %v1442_v8 }
 0x1e5   :  { %v1969_v9 = vpop.f32.mrb[28].mxu1 }
 0x1e6   :  { %1762 = vst.msk [vmem:[%s2245_s3 + $0xe8] sm:$0xff] %vm215_vm1, %v1969_v9  ;;  %v1638_v10 = vpop.f32.mrb[29].mxu1 }
 0x1e7   :  { %1761 = vst.msk [vmem:[%s2245_s3 + $0xe0] sm:$0xff] %vm215_vm1, %v1638_v10 }
 0x1e9   :  { %v1972_v11 = vpop.f32.mrb[30].mxu1 }
 0x1ea   :  { %1764 = vst.msk [vmem:[%s2245_s3 + $0xf8] sm:$0xff] %vm215_vm1, %v1972_v11  ;;  %v1648_v12 = vpop.f32.mrb[31].mxu1 }
 0x1eb   :  { %1763 = vst.msk [vmem:[%s2245_s3 + $0xf0] sm:$0xff] %vm215_vm1, %v1648_v12 }

</bundles_post_ra>
